<compile_context>
chip_gen: v6e
topology: v6e:2x2x1
jax: 0.10.0
libtpu: 0.0.40
codegen_flags: <defaults>
</compile_context>

<pallas_src>
import functools
import math

import jax
import jax.numpy as jnp
from jax.experimental import pallas as pl
from jax.experimental.pallas import tpu as pltpu


# ----------------------------------------------------------------------------
# In-kernel helpers (traced inside the Pallas kernels)
# ----------------------------------------------------------------------------

def _multi_head_attention(q, k, v, neg_mask, wo_ref, bo, n_head):
    """Multi-head scaled-dot-product attention + fused output projection.

    q:   (Tq, D) f32, already scaled by 1/sqrt(dk) (folded into Wq).
    k,v: (Lk, D) bf16 (from persistent VMEM scratch).
    neg_mask: (Tq, Lk) bool, True where the position is masked out.
    Returns (Tq, D) f32.
    """
    Tq, D = q.shape
    dk = D // n_head
    qb = q.astype(jnp.bfloat16)
    ctx = []
    for h in range(n_head):
        sl = slice(h * dk, (h + 1) * dk)
        # q @ k^T without an explicit (XLU) transpose of k; bf16 MXU, f32 acc.
        s = jax.lax.dot_general(qb[:, sl], k[:, sl], (((1,), (1,)), ((), ())),
                                preferred_element_type=jnp.float32)
        # Exactly PyTorch's masked_fill(mask == 0, -10000) before softmax.
        s = jnp.where(neg_mask, -10000.0, s)
        s = s - jnp.max(s, axis=-1, keepdims=True)
        p = jnp.exp(s)
        p = p * pl.reciprocal(jnp.sum(p, axis=-1, keepdims=True), approx=True)
        ctx.append(jnp.dot(p.astype(jnp.bfloat16), v[:, sl],
                           preferred_element_type=jnp.float32))
    # One full-depth (K = D) output projection instead of n_head K = dk matmuls.
    ctx = jnp.concatenate(ctx, axis=-1).astype(jnp.bfloat16)     # (Tq, D)
    return jnp.dot(ctx, wo_ref[...], preferred_element_type=jnp.float32) + bo


def _residual_layernorm(y, res, gamma, beta, eps):
    """LayerNorm(y + res) over the last dim, statistics in f32."""
    y = y.astype(jnp.float32) + res.astype(jnp.float32)
    mean = jnp.mean(y, axis=-1, keepdims=True)
    var = jnp.mean((y - mean) ** 2, axis=-1, keepdims=True)
    y = (y - mean) * jax.lax.rsqrt(var + eps)
    return y * gamma + beta


# ----------------------------------------------------------------------------
# Fused Pallas kernels
# ----------------------------------------------------------------------------

def _attn_ln_kernel(xq_ref, xkv_ref, mask_ref, wq_ref, bq_ref, wkv_ref, bkv_ref,
                    wo_ref, bo_ref, g_ref, b_ref, o_ref, kv_scratch,
                    *, n_head, eps):
    """out_tile = LN(MHA(x_q_tile, x_kv) + x_q_tile).  grid = (B, Lq/Tq)."""
    D = xq_ref.shape[-1]

    # K|V projection is shared by every query tile of this batch element:
    # compute it once (query-tile 0) into VMEM scratch that persists across the
    # "arbitrary" query-tile grid axis.
    @pl.when(pl.program_id(1) == 0)
    def _():
        xkv = xkv_ref[0].astype(jnp.bfloat16)                    # (Lk, D)
        kv = jnp.dot(xkv, wkv_ref[...],
                     preferred_element_type=jnp.float32) + bkv_ref[...]
        kv_scratch[...] = kv.astype(jnp.bfloat16)

    xq = xq_ref[0]                                               # (Tq, D) residual
    # 1/sqrt(dk) is pre-folded into wq / bq -> no per-score scaling needed.
    q = jnp.dot(xq.astype(jnp.bfloat16), wq_ref[...],
                preferred_element_type=jnp.float32) + bq_ref[...]
    k = kv_scratch[:, :D]
    v = kv_scratch[:, D:]
    neg_mask = mask_ref[0] == 0                                  # (Tq, Lk) bool

    attn = _multi_head_attention(q, k, v, neg_mask, wo_ref, bo_ref[...], n_head)
    # dropout is identity in eval mode
    y = _residual_layernorm(attn, xq, g_ref[...], b_ref[...], eps)
    o_ref[0] = y.astype(o_ref.dtype)


def _ffn_ln_kernel(x_ref, w1_ref, b1_ref, w2_ref, b2_ref, g_ref, b_ref,
                   o_ref, *, eps):
    """out_tile = LN(W2(relu(W1 x_tile)) + x_tile).  grid = (B, L/Tm)."""
    x = x_ref[0]                                                 # (Tm, D)
    h = jnp.dot(x.astype(jnp.bfloat16), w1_ref[...],
                preferred_element_type=jnp.float32) + b1_ref[...]
    h = jnp.maximum(h, 0.0)                                      # ReLU (inner dropout = identity)
    y = jnp.dot(h.astype(jnp.bfloat16), w2_ref[...],
                preferred_element_type=jnp.float32) + b2_ref[...]
    # dropout3 is identity in eval mode
    y = _residual_layernorm(y, x, g_ref[...], b_ref[...], eps)
    o_ref[0] = y.astype(o_ref.dtype)


# ----------------------------------------------------------------------------
# Wrappers (one pallas_call per fused block)
# ----------------------------------------------------------------------------

def _pick_tile(n, pref=256):
    """Largest sequence tile <= pref that divides n (multiple of 8), else n."""
    if n <= pref:
        return n
    for t in range(pref, 7, -8):
        if n % t == 0:
            return t
    return n


def attention_block(xq, xkv, mask, p, ln_g, ln_b, n_head, eps=1e-5):
    """LN(MultiHeadAttention(q=xq, k=xkv, v=xkv, mask) + xq) in one pallas_call.

    Self-attention is the xkv=xq special case, so one kernel serves both blocks.
    """
    B, Lq, D = xq.shape
    Lk = xkv.shape[1]
    tq = _pick_tile(Lq)
    # Raw mask (not a precomputed f32 bias); bf16 halves its HBM traffic.
    mask2d = mask.reshape(B, Lq, Lk).astype(jnp.bfloat16)
    return pl.pallas_call(
        functools.partial(_attn_ln_kernel, n_head=n_head, eps=eps),
        out_shape=jax.ShapeDtypeStruct((B, Lq, D), xq.dtype),
        grid=(B, Lq // tq),
        in_specs=[
            pl.BlockSpec((1, tq, D), lambda b, i: (b, i, 0)),     # x_q tile (+ residual)
            pl.BlockSpec((1, Lk, D), lambda b, i: (b, 0, 0)),     # x_kv (fetched once per b)
            pl.BlockSpec((1, tq, Lk), lambda b, i: (b, i, 0)),    # mask tile (bf16)
            pl.BlockSpec((D, D), lambda b, i: (0, 0)),            # wq (bf16, pre-scaled)
            pl.BlockSpec((1, D), lambda b, i: (0, 0)),            # bq (f32, pre-scaled)
            pl.BlockSpec((D, 2 * D), lambda b, i: (0, 0)),        # wkv (bf16)
            pl.BlockSpec((1, 2 * D), lambda b, i: (0, 0)),        # bkv (f32)
            pl.BlockSpec((D, D), lambda b, i: (0, 0)),            # wo (bf16)
            pl.BlockSpec((1, D), lambda b, i: (0, 0)),            # bo (f32)
            pl.BlockSpec((1, D), lambda b, i: (0, 0)),            # ln gamma
            pl.BlockSpec((1, D), lambda b, i: (0, 0)),            # ln beta
        ],
        out_specs=pl.BlockSpec((1, tq, D), lambda b, i: (b, i, 0)),
        scratch_shapes=[pltpu.VMEM((Lk, 2 * D), jnp.bfloat16)],   # K|V, reused across q-tiles
        compiler_params=pltpu.CompilerParams(
            dimension_semantics=("parallel", "arbitrary")),
    )(xq, xkv, mask2d, p["wq"], p["bq"], p["wkv"], p["bkv"], p["wo"], p["bo"],
      ln_g, ln_b)


def ffn_block(x, p, ln_g, ln_b, eps=1e-5):
    B, L, D = x.shape
    dff = p["w1"].shape[1]
    tm = _pick_tile(L)
    return pl.pallas_call(
        functools.partial(_ffn_ln_kernel, eps=eps),
        out_shape=jax.ShapeDtypeStruct((B, L, D), x.dtype),
        grid=(B, L // tm),
        in_specs=[
            pl.BlockSpec((1, tm, D), lambda b, i: (b, i, 0)),     # x tile
            pl.BlockSpec((D, dff), lambda b, i: (0, 0)),          # w1 (bf16)
            pl.BlockSpec((1, dff), lambda b, i: (0, 0)),          # b1 (f32)
            pl.BlockSpec((dff, D), lambda b, i: (0, 0)),          # w2 (bf16)
            pl.BlockSpec((1, D), lambda b, i: (0, 0)),            # b2 (f32)
            pl.BlockSpec((1, D), lambda b, i: (0, 0)),            # ln gamma
            pl.BlockSpec((1, D), lambda b, i: (0, 0)),            # ln beta
        ],
        out_specs=pl.BlockSpec((1, tm, D), lambda b, i: (b, i, 0)),
        compiler_params=pltpu.CompilerParams(
            dimension_semantics=("parallel", "parallel")),
    )(x, p["w1"], p["b1"], p["w2"], p["b2"], ln_g, ln_b)


def decoder_layer(x, c, trg_mask, src_mask, params, n_head):
    # block 1: masked self-attention + out proj + residual + LN1 (one pallas_call)
    x = attention_block(x, x, trg_mask, params["attn1"],
                        params["ln1_g"], params["ln1_b"], n_head)
    # block 2: cross-attention + out proj + residual + LN2 (one pallas_call)
    x = attention_block(x, c, src_mask, params["attn2"],
                        params["ln2_g"], params["ln2_b"], n_head)
    # block 3: position-wise FFN + residual + LN3 (one pallas_call)
    x = ffn_block(x, params["ffn"], params["ln3_g"], params["ln3_b"])
    return x


# ----------------------------------------------------------------------------
# Deterministic parameter init
#   * matmul weights stored bf16 (MXU operand dtype)
#   * K and V projections concatenated into one (D, 2D) weight
#   * 1/sqrt(dk) folded into the Q projection (f32 scaling, then bf16 cast)
# ----------------------------------------------------------------------------

def init_params(key, d_model, dff, n_head):
    keys = iter(jax.random.split(key, 32))
    scale = 1.0 / math.sqrt(d_model // n_head)

    def lin(din, dout):
        w = jax.random.normal(next(keys), (din, dout), jnp.float32) * 0.02
        b = jax.random.normal(next(keys), (dout,), jnp.float32) * 0.02
        return w, b

    def mha():
        wq, bq = lin(d_model, d_model)
        wk, bk = lin(d_model, d_model)
        wv, bv = lin(d_model, d_model)
        wo, bo = lin(d_model, d_model)
        return dict(
            wq=(wq * scale).astype(jnp.bfloat16),
            bq=(bq * scale).reshape(1, d_model),
            wkv=jnp.concatenate([wk, wv], axis=1).astype(jnp.bfloat16),
            bkv=jnp.concatenate([bk, bv]).reshape(1, 2 * d_model),
            wo=wo.astype(jnp.bfloat16),
            bo=bo.reshape(1, d_model))

    w1, b1 = lin(d_model, dff)
    w2, b2 = lin(dff, d_model)
    ones = jnp.ones((1, d_model), jnp.float32)
    zeros = jnp.zeros((1, d_model), jnp.float32)
    return dict(
        attn1=mha(),
        attn2=mha(),
        ffn=dict(w1=w1.astype(jnp.bfloat16), b1=b1.reshape(1, dff),
                 w2=w2.astype(jnp.bfloat16), b2=b2.reshape(1, d_model)),
        ln1_g=ones, ln1_b=zeros,
        ln2_g=ones, ln2_b=zeros,
        ln3_g=ones, ln3_b=zeros,
    )


# ----------------------------------------------------------------------------
# Main
# ----------------------------------------------------------------------------

if __name__ == "__main__":
    B, L_trg, L_src = 2, 8, 16
    d_model, n_head, dff = 32, 4, 64

    key = jax.random.PRNGKey(0)
    kx, kc, kp = jax.random.split(key, 3)

    x = jax.random.normal(kx, (B, L_trg, d_model), jnp.float32)   # decoder input
    c = jax.random.normal(kc, (B, L_src, d_model), jnp.float32)   # encoder output
    # causal target mask (1 = keep, 0 = masked), PyTorch convention
    trg_mask = jnp.broadcast_to(
        jnp.tril(jnp.ones((L_trg, L_trg), jnp.float32))[None, None],
        (B, 1, L_trg, L_trg))
    # full source mask
    src_mask = jnp.ones((B, 1, L_trg, L_src), jnp.float32)

    params = init_params(kp, d_model, dff, n_head)

    fwd = jax.jit(functools.partial(decoder_layer, n_head=n_head))
    out = fwd(x, c, trg_mask, src_mask, params)
    out = jax.block_until_ready(out)
    assert out.shape == (B, L_trg, d_model)
    assert bool(jnp.all(jnp.isfinite(out)))
    print("KERNEL_OK")
</pallas_src>

<mosaic_0001>
module attributes {stable_mosaic.version = 11 : i64} {
  func.func @_attn_ln_kernel(%arg0: i32, %arg1: i32, %arg2: memref<1x8x32xf32, #tpu.memory_space<vmem>>, %arg3: memref<1x16x32xf32, #tpu.memory_space<vmem>>, %arg4: memref<1x8x16xbf16, #tpu.memory_space<vmem>>, %arg5: memref<32x32xbf16, #tpu.memory_space<vmem>>, %arg6: memref<1x32xf32, #tpu.memory_space<vmem>>, %arg7: memref<32x64xbf16, #tpu.memory_space<vmem>>, %arg8: memref<1x64xf32, #tpu.memory_space<vmem>>, %arg9: memref<32x32xbf16, #tpu.memory_space<vmem>>, %arg10: memref<1x32xf32, #tpu.memory_space<vmem>>, %arg11: memref<1x32xf32, #tpu.memory_space<vmem>>, %arg12: memref<1x32xf32, #tpu.memory_space<vmem>>, %arg13: memref<1x8x32xf32, #tpu.memory_space<vmem>>, %arg14: memref<16x64xbf16, #tpu.memory_space<vmem>>) attributes {dimension_semantics = [#tpu.dimension_semantics<parallel>, #tpu.dimension_semantics<arbitrary>], iteration_bounds = array<i64: 2, 1>, scalar_prefetch = 0 : i64, scratch_operands = 1 : i64, tpu.core_type = #tpu.core_type<tc>, window_params = [{transform_indices = @transform_0, window_bounds = array<i64: 1, 8, 32>}, {transform_indices = @transform_1, window_bounds = array<i64: 1, 16, 32>}, {transform_indices = @transform_2, window_bounds = array<i64: 1, 8, 16>}, {pipeline_mode = #tpu.pipeline_mode<synchronous>, transform_indices = @transform_3, window_bounds = array<i64: 32, 32>}, {pipeline_mode = #tpu.pipeline_mode<synchronous>, transform_indices = @transform_4, window_bounds = array<i64: 1, 32>}, {pipeline_mode = #tpu.pipeline_mode<synchronous>, transform_indices = @transform_5, window_bounds = array<i64: 32, 64>}, {pipeline_mode = #tpu.pipeline_mode<synchronous>, transform_indices = @transform_6, window_bounds = array<i64: 1, 64>}, {pipeline_mode = #tpu.pipeline_mode<synchronous>, transform_indices = @transform_7, window_bounds = array<i64: 32, 32>}, {pipeline_mode = #tpu.pipeline_mode<synchronous>, transform_indices = @transform_8, window_bounds = array<i64: 1, 32>}, {pipeline_mode = #tpu.pipeline_mode<synchronous>, transform_indices = @transform_9, window_bounds = array<i64: 1, 32>}, {pipeline_mode = #tpu.pipeline_mode<synchronous>, transform_indices = @transform_10, window_bounds = array<i64: 1, 32>}, {transform_indices = @transform_11, window_bounds = array<i64: 1, 8, 32>}]} {
    %c0_i32 = arith.constant 0 : i32
    %0 = arith.cmpi eq, %arg1, %c0_i32 : i32
    %1 = arith.extui %0 : i1 to i32
    %c0_i32_0 = arith.constant 0 : i32
    %2 = arith.cmpi ne, %1, %c0_i32_0 : i32
    scf.if %2 {
      %c0_51 = arith.constant 0 : index
      %c0_52 = arith.constant 0 : index
      %c0_53 = arith.constant 0 : index
      %125 = vector.load %arg3[%c0_51, %c0_52, %c0_53] : memref<1x16x32xf32, #tpu.memory_space<vmem>>, vector<1x16x32xf32>
      %126 = vector.shape_cast %125 : vector<1x16x32xf32> to vector<16x32xf32>
      %127 = arith.truncf %126 : vector<16x32xf32> to vector<16x32xbf16>
      %c0_54 = arith.constant 0 : index
      %c0_55 = arith.constant 0 : index
      %128 = vector.load %arg7[%c0_54, %c0_55] : memref<32x64xbf16, #tpu.memory_space<vmem>>, vector<32x64xbf16>
      %cst_56 = arith.constant dense<0.000000e+00> : vector<16x64xf32>
      %129 = tpu.matmul %127, %128, %cst_56 {dimension_numbers = #tpu.dot_dimension_numbers<[1], [0], [0], [1], [0, 0, 1, 1], [], []>} : vector<16x32xbf16>, vector<32x64xbf16>, vector<16x64xf32> -> vector<16x64xf32>
      %c0_57 = arith.constant 0 : index
      %c0_58 = arith.constant 0 : index
      %130 = vector.load %arg8[%c0_57, %c0_58] : memref<1x64xf32, #tpu.memory_space<vmem>>, vector<1x64xf32>
      %131 = vector.broadcast %130 : vector<1x64xf32> to vector<16x64xf32>
      %132 = arith.addf %129, %131 : vector<16x64xf32>
      %133 = arith.truncf %132 : vector<16x64xf32> to vector<16x64xbf16>
      %c0_59 = arith.constant 0 : index
      %c0_60 = arith.constant 0 : index
      %134 = vector.load %arg14[%c0_59, %c0_60] : memref<16x64xbf16, #tpu.memory_space<vmem>>, vector<16x64xbf16>
      tpu.vector_store %arg14[%c0_59, %c0_60], %133 {strides = array<i32>} : memref<16x64xbf16, #tpu.memory_space<vmem>>, vector<16x64xbf16>,
    } else {
    }
    %c0 = arith.constant 0 : index
    %c0_1 = arith.constant 0 : index
    %c0_2 = arith.constant 0 : index
    %3 = vector.load %arg2[%c0, %c0_1, %c0_2] : memref<1x8x32xf32, #tpu.memory_space<vmem>>, vector<1x8x32xf32>
    %4 = vector.shape_cast %3 : vector<1x8x32xf32> to vector<8x32xf32>
    %5 = arith.truncf %4 : vector<8x32xf32> to vector<8x32xbf16>
    %c0_3 = arith.constant 0 : index
    %c0_4 = arith.constant 0 : index
    %6 = vector.load %arg5[%c0_3, %c0_4] : memref<32x32xbf16, #tpu.memory_space<vmem>>, vector<32x32xbf16>
    %cst = arith.constant dense<0.000000e+00> : vector<8x32xf32>
    %7 = tpu.matmul %5, %6, %cst {dimension_numbers = #tpu.dot_dimension_numbers<[1], [0], [0], [1], [0, 0, 1, 1], [], []>} : vector<8x32xbf16>, vector<32x32xbf16>, vector<8x32xf32> -> vector<8x32xf32>
    %c0_5 = arith.constant 0 : index
    %c0_6 = arith.constant 0 : index
    %8 = vector.load %arg6[%c0_5, %c0_6] : memref<1x32xf32, #tpu.memory_space<vmem>>, vector<1x32xf32>
    %9 = vector.broadcast %8 : vector<1x32xf32> to vector<8x32xf32>
    %10 = arith.addf %7, %9 : vector<8x32xf32>
    %c0_7 = arith.constant 0 : index
    %c0_8 = arith.constant 0 : index
    %11 = vector.load %arg14[%c0_7, %c0_8] : memref<16x64xbf16, #tpu.memory_space<vmem>>, vector<16x32xbf16>
    %c0_9 = arith.constant 0 : index
    %c32 = arith.constant 32 : index
    %12 = vector.load %arg14[%c0_9, %c32] : memref<16x64xbf16, #tpu.memory_space<vmem>>, vector<16x32xbf16>
    %c0_10 = arith.constant 0 : index
    %c0_11 = arith.constant 0 : index
    %c0_12 = arith.constant 0 : index
    %13 = vector.load %arg4[%c0_10, %c0_11, %c0_12] : memref<1x8x16xbf16, #tpu.memory_space<vmem>>, vector<1x8x16xbf16>
    %14 = vector.shape_cast %13 : vector<1x8x16xbf16> to vector<8x16xbf16>
    %cst_13 = arith.constant 0.000000e+00 : bf16
    %15 = vector.broadcast %cst_13 : bf16 to vector<8x16xbf16>
    %16 = arith.cmpf oeq, %14, %15 : vector<8x16xbf16>
    %c0_14 = arith.constant 0 : index
    %c0_15 = arith.constant 0 : index
    %17 = vector.load %arg10[%c0_14, %c0_15] : memref<1x32xf32, #tpu.memory_space<vmem>>, vector<1x32xf32>
    %18 = arith.truncf %10 : vector<8x32xf32> to vector<8x32xbf16>
    %19 = vector.extract_strided_slice %18 {offsets = [0, 0], sizes = [8, 8], strides = [1, 1]} : vector<8x32xbf16> to vector<8x8xbf16>
    %20 = vector.extract_strided_slice %11 {offsets = [0, 0], sizes = [16, 8], strides = [1, 1]} : vector<16x32xbf16> to vector<16x8xbf16>
    %cst_16 = arith.constant dense<0.000000e+00> : vector<8x16xf32>
    %21 = tpu.matmul %19, %20, %cst_16 {dimension_numbers = #tpu.dot_dimension_numbers<[1], [1], [0], [0], [0, 0, 1, 0], [], []>} : vector<8x8xbf16>, vector<16x8xbf16>, vector<8x16xf32> -> vector<8x16xf32>
    %cst_17 = arith.constant -1.000000e+04 : f32
    %22 = vector.broadcast %cst_17 : f32 to vector<8x16xf32>
    %23 = arith.select %16, %22, %21 : vector<8x16xi1>, vector<8x16xf32>
    %cst_18 = arith.constant dense<0xFF800000> : vector<8xf32>
    %24 = vector.multi_reduction <maximumf>, %23, %cst_18 [1] : vector<8x16xf32> to vector<8xf32>
    %25 = vector.shape_cast %24 : vector<8xf32> to vector<8x1xf32>
    %26 = vector.broadcast %25 : vector<8x1xf32> to vector<8x16xf32>
    %27 = arith.subf %23, %26 : vector<8x16xf32>
    %28 = math.exp %27 : vector<8x16xf32>
    %cst_19 = arith.constant dense<0.000000e+00> : vector<8xf32>
    %29 = vector.multi_reduction <add>, %28, %cst_19 [1] : vector<8x16xf32> to vector<8xf32>
    %30 = vector.shape_cast %29 : vector<8xf32> to vector<8x1xf32>
    %31 = tpu.reciprocal %30 {approx = true} : vector<8x1xf32> -> vector<8x1xf32>
    %32 = vector.broadcast %31 : vector<8x1xf32> to vector<8x16xf32>
    %33 = arith.mulf %28, %32 : vector<8x16xf32>
    %34 = arith.truncf %33 : vector<8x16xf32> to vector<8x16xbf16>
    %35 = vector.extract_strided_slice %12 {offsets = [0, 0], sizes = [16, 8], strides = [1, 1]} : vector<16x32xbf16> to vector<16x8xbf16>
    %cst_20 = arith.constant dense<0.000000e+00> : vector<8x8xf32>
    %36 = tpu.matmul %34, %35, %cst_20 {dimension_numbers = #tpu.dot_dimension_numbers<[1], [0], [0], [1], [0, 0, 1, 1], [], []>} : vector<8x16xbf16>, vector<16x8xbf16>, vector<8x8xf32> -> vector<8x8xf32>
    %37 = vector.extract_strided_slice %18 {offsets = [0, 8], sizes = [8, 8], strides = [1, 1]} : vector<8x32xbf16> to vector<8x8xbf16>
    %38 = vector.extract_strided_slice %11 {offsets = [0, 8], sizes = [16, 8], strides = [1, 1]} : vector<16x32xbf16> to vector<16x8xbf16>
    %cst_21 = arith.constant dense<0.000000e+00> : vector<8x16xf32>
    %39 = tpu.matmul %37, %38, %cst_21 {dimension_numbers = #tpu.dot_dimension_numbers<[1], [1], [0], [0], [0, 0, 1, 0], [], []>} : vector<8x8xbf16>, vector<16x8xbf16>, vector<8x16xf32> -> vector<8x16xf32>
    %cst_22 = arith.constant -1.000000e+04 : f32
    %40 = vector.broadcast %cst_22 : f32 to vector<8x16xf32>
    %41 = arith.select %16, %40, %39 : vector<8x16xi1>, vector<8x16xf32>
    %cst_23 = arith.constant dense<0xFF800000> : vector<8xf32>
    %42 = vector.multi_reduction <maximumf>, %41, %cst_23 [1] : vector<8x16xf32> to vector<8xf32>
    %43 = vector.shape_cast %42 : vector<8xf32> to vector<8x1xf32>
    %44 = vector.broadcast %43 : vector<8x1xf32> to vector<8x16xf32>
    %45 = arith.subf %41, %44 : vector<8x16xf32>
    %46 = math.exp %45 : vector<8x16xf32>
    %cst_24 = arith.constant dense<0.000000e+00> : vector<8xf32>
    %47 = vector.multi_reduction <add>, %46, %cst_24 [1] : vector<8x16xf32> to vector<8xf32>
    %48 = vector.shape_cast %47 : vector<8xf32> to vector<8x1xf32>
    %49 = tpu.reciprocal %48 {approx = true} : vector<8x1xf32> -> vector<8x1xf32>
    %50 = vector.broadcast %49 : vector<8x1xf32> to vector<8x16xf32>
    %51 = arith.mulf %46, %50 : vector<8x16xf32>
    %52 = arith.truncf %51 : vector<8x16xf32> to vector<8x16xbf16>
    %53 = vector.extract_strided_slice %12 {offsets = [0, 8], sizes = [16, 8], strides = [1, 1]} : vector<16x32xbf16> to vector<16x8xbf16>
    %cst_25 = arith.constant dense<0.000000e+00> : vector<8x8xf32>
    %54 = tpu.matmul %52, %53, %cst_25 {dimension_numbers = #tpu.dot_dimension_numbers<[1], [0], [0], [1], [0, 0, 1, 1], [], []>} : vector<8x16xbf16>, vector<16x8xbf16>, vector<8x8xf32> -> vector<8x8xf32>
    %55 = vector.extract_strided_slice %18 {offsets = [0, 16], sizes = [8, 8], strides = [1, 1]} : vector<8x32xbf16> to vector<8x8xbf16>
    %56 = vector.extract_strided_slice %11 {offsets = [0, 16], sizes = [16, 8], strides = [1, 1]} : vector<16x32xbf16> to vector<16x8xbf16>
    %cst_26 = arith.constant dense<0.000000e+00> : vector<8x16xf32>
    %57 = tpu.matmul %55, %56, %cst_26 {dimension_numbers = #tpu.dot_dimension_numbers<[1], [1], [0], [0], [0, 0, 1, 0], [], []>} : vector<8x8xbf16>, vector<16x8xbf16>, vector<8x16xf32> -> vector<8x16xf32>
    %cst_27 = arith.constant -1.000000e+04 : f32
    %58 = vector.broadcast %cst_27 : f32 to vector<8x16xf32>
    %59 = arith.select %16, %58, %57 : vector<8x16xi1>, vector<8x16xf32>
    %cst_28 = arith.constant dense<0xFF800000> : vector<8xf32>
    %60 = vector.multi_reduction <maximumf>, %59, %cst_28 [1] : vector<8x16xf32> to vector<8xf32>
    %61 = vector.shape_cast %60 : vector<8xf32> to vector<8x1xf32>
    %62 = vector.broadcast %61 : vector<8x1xf32> to vector<8x16xf32>
    %63 = arith.subf %59, %62 : vector<8x16xf32>
    %64 = math.exp %63 : vector<8x16xf32>
    %cst_29 = arith.constant dense<0.000000e+00> : vector<8xf32>
    %65 = vector.multi_reduction <add>, %64, %cst_29 [1] : vector<8x16xf32> to vector<8xf32>
    %66 = vector.shape_cast %65 : vector<8xf32> to vector<8x1xf32>
    %67 = tpu.reciprocal %66 {approx = true} : vector<8x1xf32> -> vector<8x1xf32>
    %68 = vector.broadcast %67 : vector<8x1xf32> to vector<8x16xf32>
    %69 = arith.mulf %64, %68 : vector<8x16xf32>
    %70 = arith.truncf %69 : vector<8x16xf32> to vector<8x16xbf16>
    %71 = vector.extract_strided_slice %12 {offsets = [0, 16], sizes = [16, 8], strides = [1, 1]} : vector<16x32xbf16> to vector<16x8xbf16>
    %cst_30 = arith.constant dense<0.000000e+00> : vector<8x8xf32>
    %72 = tpu.matmul %70, %71, %cst_30 {dimension_numbers = #tpu.dot_dimension_numbers<[1], [0], [0], [1], [0, 0, 1, 1], [], []>} : vector<8x16xbf16>, vector<16x8xbf16>, vector<8x8xf32> -> vector<8x8xf32>
    %73 = vector.extract_strided_slice %18 {offsets = [0, 24], sizes = [8, 8], strides = [1, 1]} : vector<8x32xbf16> to vector<8x8xbf16>
    %74 = vector.extract_strided_slice %11 {offsets = [0, 24], sizes = [16, 8], strides = [1, 1]} : vector<16x32xbf16> to vector<16x8xbf16>
    %cst_31 = arith.constant dense<0.000000e+00> : vector<8x16xf32>
    %75 = tpu.matmul %73, %74, %cst_31 {dimension_numbers = #tpu.dot_dimension_numbers<[1], [1], [0], [0], [0, 0, 1, 0], [], []>} : vector<8x8xbf16>, vector<16x8xbf16>, vector<8x16xf32> -> vector<8x16xf32>
    %cst_32 = arith.constant -1.000000e+04 : f32
    %76 = vector.broadcast %cst_32 : f32 to vector<8x16xf32>
    %77 = arith.select %16, %76, %75 : vector<8x16xi1>, vector<8x16xf32>
    %cst_33 = arith.constant dense<0xFF800000> : vector<8xf32>
    %78 = vector.multi_reduction <maximumf>, %77, %cst_33 [1] : vector<8x16xf32> to vector<8xf32>
    %79 = vector.shape_cast %78 : vector<8xf32> to vector<8x1xf32>
    %80 = vector.broadcast %79 : vector<8x1xf32> to vector<8x16xf32>
    %81 = arith.subf %77, %80 : vector<8x16xf32>
    %82 = math.exp %81 : vector<8x16xf32>
    %cst_34 = arith.constant dense<0.000000e+00> : vector<8xf32>
    %83 = vector.multi_reduction <add>, %82, %cst_34 [1] : vector<8x16xf32> to vector<8xf32>
    %84 = vector.shape_cast %83 : vector<8xf32> to vector<8x1xf32>
    %85 = tpu.reciprocal %84 {approx = true} : vector<8x1xf32> -> vector<8x1xf32>
    %86 = vector.broadcast %85 : vector<8x1xf32> to vector<8x16xf32>
    %87 = arith.mulf %82, %86 : vector<8x16xf32>
    %88 = arith.truncf %87 : vector<8x16xf32> to vector<8x16xbf16>
    %89 = vector.extract_strided_slice %12 {offsets = [0, 24], sizes = [16, 8], strides = [1, 1]} : vector<16x32xbf16> to vector<16x8xbf16>
    %cst_35 = arith.constant dense<0.000000e+00> : vector<8x8xf32>
    %90 = tpu.matmul %88, %89, %cst_35 {dimension_numbers = #tpu.dot_dimension_numbers<[1], [0], [0], [1], [0, 0, 1, 1], [], []>} : vector<8x16xbf16>, vector<16x8xbf16>, vector<8x8xf32> -> vector<8x8xf32>
    %91 = tpu.concatenate %36, %54, %72, %90 in 1 : vector<8x8xf32>, vector<8x8xf32>, vector<8x8xf32>, vector<8x8xf32> -> vector<8x32xf32>
    %92 = arith.truncf %91 : vector<8x32xf32> to vector<8x32xbf16>
    %c0_36 = arith.constant 0 : index
    %c0_37 = arith.constant 0 : index
    %93 = vector.load %arg9[%c0_36, %c0_37] : memref<32x32xbf16, #tpu.memory_space<vmem>>, vector<32x32xbf16>
    %cst_38 = arith.constant dense<0.000000e+00> : vector<8x32xf32>
    %94 = tpu.matmul %92, %93, %cst_38 {dimension_numbers = #tpu.dot_dimension_numbers<[1], [0], [0], [1], [0, 0, 1, 1], [], []>} : vector<8x32xbf16>, vector<32x32xbf16>, vector<8x32xf32> -> vector<8x32xf32>
    %95 = vector.broadcast %17 : vector<1x32xf32> to vector<8x32xf32>
    %96 = arith.addf %94, %95 : vector<8x32xf32>
    %c0_39 = arith.constant 0 : index
    %c0_40 = arith.constant 0 : index
    %97 = vector.load %arg11[%c0_39, %c0_40] : memref<1x32xf32, #tpu.memory_space<vmem>>, vector<1x32xf32>
    %c0_41 = arith.constant 0 : index
    %c0_42 = arith.constant 0 : index
    %98 = vector.load %arg12[%c0_41, %c0_42] : memref<1x32xf32, #tpu.memory_space<vmem>>, vector<1x32xf32>
    %99 = arith.addf %96, %4 : vector<8x32xf32>
    %cst_43 = arith.constant dense<0.000000e+00> : vector<8xf32>
    %100 = vector.multi_reduction <add>, %99, %cst_43 [1] : vector<8x32xf32> to vector<8xf32>
    %101 = vector.shape_cast %100 : vector<8xf32> to vector<8x1xf32>
    %cst_44 = arith.constant 3.200000e+01 : f32
    %102 = vector.broadcast %cst_44 : f32 to vector<8x1xf32>
    %103 = arith.divf %101, %102 : vector<8x1xf32>
    %104 = vector.broadcast %103 : vector<8x1xf32> to vector<8x32xf32>
    %105 = arith.subf %99, %104 : vector<8x32xf32>
    %106 = arith.mulf %105, %105 : vector<8x32xf32>
    %cst_45 = arith.constant dense<0.000000e+00> : vector<8xf32>
    %107 = vector.multi_reduction <add>, %106, %cst_45 [1] : vector<8x32xf32> to vector<8xf32>
    %108 = vector.shape_cast %107 : vector<8xf32> to vector<8x1xf32>
    %cst_46 = arith.constant 3.200000e+01 : f32
    %109 = vector.broadcast %cst_46 : f32 to vector<8x1xf32>
    %110 = arith.divf %108, %109 : vector<8x1xf32>
    %111 = vector.broadcast %103 : vector<8x1xf32> to vector<8x32xf32>
    %112 = arith.subf %99, %111 : vector<8x32xf32>
    %cst_47 = arith.constant 9.99999974E-6 : f32
    %113 = vector.broadcast %cst_47 : f32 to vector<8x1xf32>
    %114 = arith.addf %110, %113 : vector<8x1xf32>
    %115 = math.rsqrt %114 : vector<8x1xf32>
    %116 = vector.broadcast %115 : vector<8x1xf32> to vector<8x32xf32>
    %117 = arith.mulf %112, %116 : vector<8x32xf32>
    %118 = vector.broadcast %97 : vector<1x32xf32> to vector<8x32xf32>
    %119 = arith.mulf %117, %118 : vector<8x32xf32>
    %120 = vector.broadcast %98 : vector<1x32xf32> to vector<8x32xf32>
    %121 = arith.addf %119, %120 : vector<8x32xf32>
    %c0_48 = arith.constant 0 : index
    %c0_49 = arith.constant 0 : index
    %c0_50 = arith.constant 0 : index
    %122 = vector.load %arg13[%c0_48, %c0_49, %c0_50] : memref<1x8x32xf32, #tpu.memory_space<vmem>>, vector<1x8x32xf32>
    %123 = vector.shape_cast %122 : vector<1x8x32xf32> to vector<8x32xf32>
    %124 = vector.shape_cast %121 : vector<8x32xf32> to vector<1x8x32xf32>
    tpu.vector_store %arg13[%c0_48, %c0_49, %c0_50], %124 {strides = array<i32>} : memref<1x8x32xf32, #tpu.memory_space<vmem>>, vector<1x8x32xf32>,
    return
  }
  func.func @transform_0(%arg0: i32, %arg1: i32) -> (i32, i32, i32) {
    %c0_i32 = arith.constant 0 : i32
    %c0_i32_0 = arith.constant 0 : i32
    return %arg0, %arg1, %c0_i32 : i32, i32, i32
  }
  func.func @transform_1(%arg0: i32, %arg1: i32) -> (i32, i32, i32) {
    %c0_i32 = arith.constant 0 : i32
    %c0_i32_0 = arith.constant 0 : i32
    %c0_i32_1 = arith.constant 0 : i32
    return %arg0, %c0_i32, %c0_i32_0 : i32, i32, i32
  }
  func.func @transform_2(%arg0: i32, %arg1: i32) -> (i32, i32, i32) {
    %c0_i32 = arith.constant 0 : i32
    %c0_i32_0 = arith.constant 0 : i32
    return %arg0, %arg1, %c0_i32 : i32, i32, i32
  }
  func.func @transform_3(%arg0: i32, %arg1: i32) -> (i32, i32) {
    %c0_i32 = arith.constant 0 : i32
    %c0_i32_0 = arith.constant 0 : i32
    %c0_i32_1 = arith.constant 0 : i32
    return %c0_i32, %c0_i32_0 : i32, i32
  }
  func.func @transform_4(%arg0: i32, %arg1: i32) -> (i32, i32) {
    %c0_i32 = arith.constant 0 : i32
    %c0_i32_0 = arith.constant 0 : i32
    %c0_i32_1 = arith.constant 0 : i32
    return %c0_i32, %c0_i32_0 : i32, i32
  }
  func.func @transform_5(%arg0: i32, %arg1: i32) -> (i32, i32) {
    %c0_i32 = arith.constant 0 : i32
    %c0_i32_0 = arith.constant 0 : i32
    %c0_i32_1 = arith.constant 0 : i32
    return %c0_i32, %c0_i32_0 : i32, i32
  }
  func.func @transform_6(%arg0: i32, %arg1: i32) -> (i32, i32) {
    %c0_i32 = arith.constant 0 : i32
    %c0_i32_0 = arith.constant 0 : i32
    %c0_i32_1 = arith.constant 0 : i32
    return %c0_i32, %c0_i32_0 : i32, i32
  }
  func.func @transform_7(%arg0: i32, %arg1: i32) -> (i32, i32) {
    %c0_i32 = arith.constant 0 : i32
    %c0_i32_0 = arith.constant 0 : i32
    %c0_i32_1 = arith.constant 0 : i32
    return %c0_i32, %c0_i32_0 : i32, i32
  }
  func.func @transform_8(%arg0: i32, %arg1: i32) -> (i32, i32) {
    %c0_i32 = arith.constant 0 : i32
    %c0_i32_0 = arith.constant 0 : i32
    %c0_i32_1 = arith.constant 0 : i32
    return %c0_i32, %c0_i32_0 : i32, i32
  }
  func.func @transform_9(%arg0: i32, %arg1: i32) -> (i32, i32) {
    %c0_i32 = arith.constant 0 : i32
    %c0_i32_0 = arith.constant 0 : i32
    %c0_i32_1 = arith.constant 0 : i32
    return %c0_i32, %c0_i32_0 : i32, i32
  }
  func.func @transform_10(%arg0: i32, %arg1: i32) -> (i32, i32) {
    %c0_i32 = arith.constant 0 : i32
    %c0_i32_0 = arith.constant 0 : i32
    %c0_i32_1 = arith.constant 0 : i32
    return %c0_i32, %c0_i32_0 : i32, i32
  }
  func.func @transform_11(%arg0: i32, %arg1: i32) -> (i32, i32, i32) {
    %c0_i32 = arith.constant 0 : i32
    %c0_i32_0 = arith.constant 0 : i32
    return %arg0, %arg1, %c0_i32 : i32, i32, i32
  }
}

module attributes {stable_mosaic.version = 11 : i64} {
  func.func @_attn_ln_kernel(%arg0: i32, %arg1: i32, %arg2: memref<1x8x32xf32, #tpu.memory_space<vmem>>, %arg3: memref<1x8x32xf32, #tpu.memory_space<vmem>>, %arg4: memref<1x8x8xbf16, #tpu.memory_space<vmem>>, %arg5: memref<32x32xbf16, #tpu.memory_space<vmem>>, %arg6: memref<1x32xf32, #tpu.memory_space<vmem>>, %arg7: memref<32x64xbf16, #tpu.memory_space<vmem>>, %arg8: memref<1x64xf32, #tpu.memory_space<vmem>>, %arg9: memref<32x32xbf16, #tpu.memory_space<vmem>>, %arg10: memref<1x32xf32, #tpu.memory_space<vmem>>, %arg11: memref<1x32xf32, #tpu.memory_space<vmem>>, %arg12: memref<1x32xf32, #tpu.memory_space<vmem>>, %arg13: memref<1x8x32xf32, #tpu.memory_space<vmem>>, %arg14: memref<8x64xbf16, #tpu.memory_space<vmem>>) attributes {dimension_semantics = [#tpu.dimension_semantics<parallel>, #tpu.dimension_semantics<arbitrary>], iteration_bounds = array<i64: 2, 1>, scalar_prefetch = 0 : i64, scratch_operands = 1 : i64, tpu.core_type = #tpu.core_type<tc>, window_params = [{transform_indices = @transform_0, window_bounds = array<i64: 1, 8, 32>}, {transform_indices = @transform_1, window_bounds = array<i64: 1, 8, 32>}, {transform_indices = @transform_2, window_bounds = array<i64: 1, 8, 8>}, {pipeline_mode = #tpu.pipeline_mode<synchronous>, transform_indices = @transform_3, window_bounds = array<i64: 32, 32>}, {pipeline_mode = #tpu.pipeline_mode<synchronous>, transform_indices = @transform_4, window_bounds = array<i64: 1, 32>}, {pipeline_mode = #tpu.pipeline_mode<synchronous>, transform_indices = @transform_5, window_bounds = array<i64: 32, 64>}, {pipeline_mode = #tpu.pipeline_mode<synchronous>, transform_indices = @transform_6, window_bounds = array<i64: 1, 64>}, {pipeline_mode = #tpu.pipeline_mode<synchronous>, transform_indices = @transform_7, window_bounds = array<i64: 32, 32>}, {pipeline_mode = #tpu.pipeline_mode<synchronous>, transform_indices = @transform_8, window_bounds = array<i64: 1, 32>}, {pipeline_mode = #tpu.pipeline_mode<synchronous>, transform_indices = @transform_9, window_bounds = array<i64: 1, 32>}, {pipeline_mode = #tpu.pipeline_mode<synchronous>, transform_indices = @transform_10, window_bounds = array<i64: 1, 32>}, {transform_indices = @transform_11, window_bounds = array<i64: 1, 8, 32>}]} {
    %c0_i32 = arith.constant 0 : i32
    %0 = arith.cmpi eq, %arg1, %c0_i32 : i32
    %1 = arith.extui %0 : i1 to i32
    %c0_i32_0 = arith.constant 0 : i32
    %2 = arith.cmpi ne, %1, %c0_i32_0 : i32
    scf.if %2 {
      %c0_51 = arith.constant 0 : index
      %c0_52 = arith.constant 0 : index
      %c0_53 = arith.constant 0 : index
      %125 = vector.load %arg3[%c0_51, %c0_52, %c0_53] : memref<1x8x32xf32, #tpu.memory_space<vmem>>, vector<1x8x32xf32>
      %126 = vector.shape_cast %125 : vector<1x8x32xf32> to vector<8x32xf32>
      %127 = arith.truncf %126 : vector<8x32xf32> to vector<8x32xbf16>
      %c0_54 = arith.constant 0 : index
      %c0_55 = arith.constant 0 : index
      %128 = vector.load %arg7[%c0_54, %c0_55] : memref<32x64xbf16, #tpu.memory_space<vmem>>, vector<32x64xbf16>
      %cst_56 = arith.constant dense<0.000000e+00> : vector<8x64xf32>
      %129 = tpu.matmul %127, %128, %cst_56 {dimension_numbers = #tpu.dot_dimension_numbers<[1], [0], [0], [1], [0, 0, 1, 1], [], []>} : vector<8x32xbf16>, vector<32x64xbf16>, vector<8x64xf32> -> vector<8x64xf32>
      %c0_57 = arith.constant 0 : index
      %c0_58 = arith.constant 0 : index
      %130 = vector.load %arg8[%c0_57, %c0_58] : memref<1x64xf32, #tpu.memory_space<vmem>>, vector<1x64xf32>
      %131 = vector.broadcast %130 : vector<1x64xf32> to vector<8x64xf32>
      %132 = arith.addf %129, %131 : vector<8x64xf32>
      %133 = arith.truncf %132 : vector<8x64xf32> to vector<8x64xbf16>
      %c0_59 = arith.constant 0 : index
      %c0_60 = arith.constant 0 : index
      %134 = vector.load %arg14[%c0_59, %c0_60] : memref<8x64xbf16, #tpu.memory_space<vmem>>, vector<8x64xbf16>
      tpu.vector_store %arg14[%c0_59, %c0_60], %133 {strides = array<i32>} : memref<8x64xbf16, #tpu.memory_space<vmem>>, vector<8x64xbf16>,
    } else {
    }
    %c0 = arith.constant 0 : index
    %c0_1 = arith.constant 0 : index
    %c0_2 = arith.constant 0 : index
    %3 = vector.load %arg2[%c0, %c0_1, %c0_2] : memref<1x8x32xf32, #tpu.memory_space<vmem>>, vector<1x8x32xf32>
    %4 = vector.shape_cast %3 : vector<1x8x32xf32> to vector<8x32xf32>
    %5 = arith.truncf %4 : vector<8x32xf32> to vector<8x32xbf16>
    %c0_3 = arith.constant 0 : index
    %c0_4 = arith.constant 0 : index
    %6 = vector.load %arg5[%c0_3, %c0_4] : memref<32x32xbf16, #tpu.memory_space<vmem>>, vector<32x32xbf16>
    %cst = arith.constant dense<0.000000e+00> : vector<8x32xf32>
    %7 = tpu.matmul %5, %6, %cst {dimension_numbers = #tpu.dot_dimension_numbers<[1], [0], [0], [1], [0, 0, 1, 1], [], []>} : vector<8x32xbf16>, vector<32x32xbf16>, vector<8x32xf32> -> vector<8x32xf32>
    %c0_5 = arith.constant 0 : index
    %c0_6 = arith.constant 0 : index
    %8 = vector.load %arg6[%c0_5, %c0_6] : memref<1x32xf32, #tpu.memory_space<vmem>>, vector<1x32xf32>
    %9 = vector.broadcast %8 : vector<1x32xf32> to vector<8x32xf32>
    %10 = arith.addf %7, %9 : vector<8x32xf32>
    %c0_7 = arith.constant 0 : index
    %c0_8 = arith.constant 0 : index
    %11 = vector.load %arg14[%c0_7, %c0_8] : memref<8x64xbf16, #tpu.memory_space<vmem>>, vector<8x32xbf16>
    %c0_9 = arith.constant 0 : index
    %c32 = arith.constant 32 : index
    %12 = vector.load %arg14[%c0_9, %c32] : memref<8x64xbf16, #tpu.memory_space<vmem>>, vector<8x32xbf16>
    %c0_10 = arith.constant 0 : index
    %c0_11 = arith.constant 0 : index
    %c0_12 = arith.constant 0 : index
    %13 = vector.load %arg4[%c0_10, %c0_11, %c0_12] : memref<1x8x8xbf16, #tpu.memory_space<vmem>>, vector<1x8x8xbf16>
    %14 = vector.shape_cast %13 : vector<1x8x8xbf16> to vector<8x8xbf16>
    %cst_13 = arith.constant 0.000000e+00 : bf16
    %15 = vector.broadcast %cst_13 : bf16 to vector<8x8xbf16>
    %16 = arith.cmpf oeq, %14, %15 : vector<8x8xbf16>
    %c0_14 = arith.constant 0 : index
    %c0_15 = arith.constant 0 : index
    %17 = vector.load %arg10[%c0_14, %c0_15] : memref<1x32xf32, #tpu.memory_space<vmem>>, vector<1x32xf32>
    %18 = arith.truncf %10 : vector<8x32xf32> to vector<8x32xbf16>
    %19 = vector.extract_strided_slice %18 {offsets = [0, 0], sizes = [8, 8], strides = [1, 1]} : vector<8x32xbf16> to vector<8x8xbf16>
    %20 = vector.extract_strided_slice %11 {offsets = [0, 0], sizes = [8, 8], strides = [1, 1]} : vector<8x32xbf16> to vector<8x8xbf16>
    %cst_16 = arith.constant dense<0.000000e+00> : vector<8x8xf32>
    %21 = tpu.matmul %19, %20, %cst_16 {dimension_numbers = #tpu.dot_dimension_numbers<[1], [1], [0], [0], [0, 0, 1, 0], [], []>} : vector<8x8xbf16>, vector<8x8xbf16>, vector<8x8xf32> -> vector<8x8xf32>
    %cst_17 = arith.constant -1.000000e+04 : f32
    %22 = vector.broadcast %cst_17 : f32 to vector<8x8xf32>
    %23 = arith.select %16, %22, %21 : vector<8x8xi1>, vector<8x8xf32>
    %cst_18 = arith.constant dense<0xFF800000> : vector<8xf32>
    %24 = vector.multi_reduction <maximumf>, %23, %cst_18 [1] : vector<8x8xf32> to vector<8xf32>
    %25 = vector.shape_cast %24 : vector<8xf32> to vector<8x1xf32>
    %26 = vector.broadcast %25 : vector<8x1xf32> to vector<8x8xf32>
    %27 = arith.subf %23, %26 : vector<8x8xf32>
    %28 = math.exp %27 : vector<8x8xf32>
    %cst_19 = arith.constant dense<0.000000e+00> : vector<8xf32>
    %29 = vector.multi_reduction <add>, %28, %cst_19 [1] : vector<8x8xf32> to vector<8xf32>
    %30 = vector.shape_cast %29 : vector<8xf32> to vector<8x1xf32>
    %31 = tpu.reciprocal %30 {approx = true} : vector<8x1xf32> -> vector<8x1xf32>
    %32 = vector.broadcast %31 : vector<8x1xf32> to vector<8x8xf32>
    %33 = arith.mulf %28, %32 : vector<8x8xf32>
    %34 = arith.truncf %33 : vector<8x8xf32> to vector<8x8xbf16>
    %35 = vector.extract_strided_slice %12 {offsets = [0, 0], sizes = [8, 8], strides = [1, 1]} : vector<8x32xbf16> to vector<8x8xbf16>
    %cst_20 = arith.constant dense<0.000000e+00> : vector<8x8xf32>
    %36 = tpu.matmul %34, %35, %cst_20 {dimension_numbers = #tpu.dot_dimension_numbers<[1], [0], [0], [1], [0, 0, 1, 1], [], []>} : vector<8x8xbf16>, vector<8x8xbf16>, vector<8x8xf32> -> vector<8x8xf32>
    %37 = vector.extract_strided_slice %18 {offsets = [0, 8], sizes = [8, 8], strides = [1, 1]} : vector<8x32xbf16> to vector<8x8xbf16>
    %38 = vector.extract_strided_slice %11 {offsets = [0, 8], sizes = [8, 8], strides = [1, 1]} : vector<8x32xbf16> to vector<8x8xbf16>
    %cst_21 = arith.constant dense<0.000000e+00> : vector<8x8xf32>
    %39 = tpu.matmul %37, %38, %cst_21 {dimension_numbers = #tpu.dot_dimension_numbers<[1], [1], [0], [0], [0, 0, 1, 0], [], []>} : vector<8x8xbf16>, vector<8x8xbf16>, vector<8x8xf32> -> vector<8x8xf32>
    %cst_22 = arith.constant -1.000000e+04 : f32
    %40 = vector.broadcast %cst_22 : f32 to vector<8x8xf32>
    %41 = arith.select %16, %40, %39 : vector<8x8xi1>, vector<8x8xf32>
    %cst_23 = arith.constant dense<0xFF800000> : vector<8xf32>
    %42 = vector.multi_reduction <maximumf>, %41, %cst_23 [1] : vector<8x8xf32> to vector<8xf32>
    %43 = vector.shape_cast %42 : vector<8xf32> to vector<8x1xf32>
    %44 = vector.broadcast %43 : vector<8x1xf32> to vector<8x8xf32>
    %45 = arith.subf %41, %44 : vector<8x8xf32>
    %46 = math.exp %45 : vector<8x8xf32>
    %cst_24 = arith.constant dense<0.000000e+00> : vector<8xf32>
    %47 = vector.multi_reduction <add>, %46, %cst_24 [1] : vector<8x8xf32> to vector<8xf32>
    %48 = vector.shape_cast %47 : vector<8xf32> to vector<8x1xf32>
    %49 = tpu.reciprocal %48 {approx = true} : vector<8x1xf32> -> vector<8x1xf32>
    %50 = vector.broadcast %49 : vector<8x1xf32> to vector<8x8xf32>
    %51 = arith.mulf %46, %50 : vector<8x8xf32>
    %52 = arith.truncf %51 : vector<8x8xf32> to vector<8x8xbf16>
    %53 = vector.extract_strided_slice %12 {offsets = [0, 8], sizes = [8, 8], strides = [1, 1]} : vector<8x32xbf16> to vector<8x8xbf16>
    %cst_25 = arith.constant dense<0.000000e+00> : vector<8x8xf32>
    %54 = tpu.matmul %52, %53, %cst_25 {dimension_numbers = #tpu.dot_dimension_numbers<[1], [0], [0], [1], [0, 0, 1, 1], [], []>} : vector<8x8xbf16>, vector<8x8xbf16>, vector<8x8xf32> -> vector<8x8xf32>
    %55 = vector.extract_strided_slice %18 {offsets = [0, 16], sizes = [8, 8], strides = [1, 1]} : vector<8x32xbf16> to vector<8x8xbf16>
    %56 = vector.extract_strided_slice %11 {offsets = [0, 16], sizes = [8, 8], strides = [1, 1]} : vector<8x32xbf16> to vector<8x8xbf16>
    %cst_26 = arith.constant dense<0.000000e+00> : vector<8x8xf32>
    %57 = tpu.matmul %55, %56, %cst_26 {dimension_numbers = #tpu.dot_dimension_numbers<[1], [1], [0], [0], [0, 0, 1, 0], [], []>} : vector<8x8xbf16>, vector<8x8xbf16>, vector<8x8xf32> -> vector<8x8xf32>
    %cst_27 = arith.constant -1.000000e+04 : f32
    %58 = vector.broadcast %cst_27 : f32 to vector<8x8xf32>
    %59 = arith.select %16, %58, %57 : vector<8x8xi1>, vector<8x8xf32>
    %cst_28 = arith.constant dense<0xFF800000> : vector<8xf32>
    %60 = vector.multi_reduction <maximumf>, %59, %cst_28 [1] : vector<8x8xf32> to vector<8xf32>
    %61 = vector.shape_cast %60 : vector<8xf32> to vector<8x1xf32>
    %62 = vector.broadcast %61 : vector<8x1xf32> to vector<8x8xf32>
    %63 = arith.subf %59, %62 : vector<8x8xf32>
    %64 = math.exp %63 : vector<8x8xf32>
    %cst_29 = arith.constant dense<0.000000e+00> : vector<8xf32>
    %65 = vector.multi_reduction <add>, %64, %cst_29 [1] : vector<8x8xf32> to vector<8xf32>
    %66 = vector.shape_cast %65 : vector<8xf32> to vector<8x1xf32>
    %67 = tpu.reciprocal %66 {approx = true} : vector<8x1xf32> -> vector<8x1xf32>
    %68 = vector.broadcast %67 : vector<8x1xf32> to vector<8x8xf32>
    %69 = arith.mulf %64, %68 : vector<8x8xf32>
    %70 = arith.truncf %69 : vector<8x8xf32> to vector<8x8xbf16>
    %71 = vector.extract_strided_slice %12 {offsets = [0, 16], sizes = [8, 8], strides = [1, 1]} : vector<8x32xbf16> to vector<8x8xbf16>
    %cst_30 = arith.constant dense<0.000000e+00> : vector<8x8xf32>
    %72 = tpu.matmul %70, %71, %cst_30 {dimension_numbers = #tpu.dot_dimension_numbers<[1], [0], [0], [1], [0, 0, 1, 1], [], []>} : vector<8x8xbf16>, vector<8x8xbf16>, vector<8x8xf32> -> vector<8x8xf32>
    %73 = vector.extract_strided_slice %18 {offsets = [0, 24], sizes = [8, 8], strides = [1, 1]} : vector<8x32xbf16> to vector<8x8xbf16>
    %74 = vector.extract_strided_slice %11 {offsets = [0, 24], sizes = [8, 8], strides = [1, 1]} : vector<8x32xbf16> to vector<8x8xbf16>
    %cst_31 = arith.constant dense<0.000000e+00> : vector<8x8xf32>
    %75 = tpu.matmul %73, %74, %cst_31 {dimension_numbers = #tpu.dot_dimension_numbers<[1], [1], [0], [0], [0, 0, 1, 0], [], []>} : vector<8x8xbf16>, vector<8x8xbf16>, vector<8x8xf32> -> vector<8x8xf32>
    %cst_32 = arith.constant -1.000000e+04 : f32
    %76 = vector.broadcast %cst_32 : f32 to vector<8x8xf32>
    %77 = arith.select %16, %76, %75 : vector<8x8xi1>, vector<8x8xf32>
    %cst_33 = arith.constant dense<0xFF800000> : vector<8xf32>
    %78 = vector.multi_reduction <maximumf>, %77, %cst_33 [1] : vector<8x8xf32> to vector<8xf32>
    %79 = vector.shape_cast %78 : vector<8xf32> to vector<8x1xf32>
    %80 = vector.broadcast %79 : vector<8x1xf32> to vector<8x8xf32>
    %81 = arith.subf %77, %80 : vector<8x8xf32>
    %82 = math.exp %81 : vector<8x8xf32>
    %cst_34 = arith.constant dense<0.000000e+00> : vector<8xf32>
    %83 = vector.multi_reduction <add>, %82, %cst_34 [1] : vector<8x8xf32> to vector<8xf32>
    %84 = vector.shape_cast %83 : vector<8xf32> to vector<8x1xf32>
    %85 = tpu.reciprocal %84 {approx = true} : vector<8x1xf32> -> vector<8x1xf32>
    %86 = vector.broadcast %85 : vector<8x1xf32> to vector<8x8xf32>
    %87 = arith.mulf %82, %86 : vector<8x8xf32>
    %88 = arith.truncf %87 : vector<8x8xf32> to vector<8x8xbf16>
    %89 = vector.extract_strided_slice %12 {offsets = [0, 24], sizes = [8, 8], strides = [1, 1]} : vector<8x32xbf16> to vector<8x8xbf16>
    %cst_35 = arith.constant dense<0.000000e+00> : vector<8x8xf32>
    %90 = tpu.matmul %88, %89, %cst_35 {dimension_numbers = #tpu.dot_dimension_numbers<[1], [0], [0], [1], [0, 0, 1, 1], [], []>} : vector<8x8xbf16>, vector<8x8xbf16>, vector<8x8xf32> -> vector<8x8xf32>
    %91 = tpu.concatenate %36, %54, %72, %90 in 1 : vector<8x8xf32>, vector<8x8xf32>, vector<8x8xf32>, vector<8x8xf32> -> vector<8x32xf32>
    %92 = arith.truncf %91 : vector<8x32xf32> to vector<8x32xbf16>
    %c0_36 = arith.constant 0 : index
    %c0_37 = arith.constant 0 : index
    %93 = vector.load %arg9[%c0_36, %c0_37] : memref<32x32xbf16, #tpu.memory_space<vmem>>, vector<32x32xbf16>
    %cst_38 = arith.constant dense<0.000000e+00> : vector<8x32xf32>
    %94 = tpu.matmul %92, %93, %cst_38 {dimension_numbers = #tpu.dot_dimension_numbers<[1], [0], [0], [1], [0, 0, 1, 1], [], []>} : vector<8x32xbf16>, vector<32x32xbf16>, vector<8x32xf32> -> vector<8x32xf32>
    %95 = vector.broadcast %17 : vector<1x32xf32> to vector<8x32xf32>
    %96 = arith.addf %94, %95 : vector<8x32xf32>
    %c0_39 = arith.constant 0 : index
    %c0_40 = arith.constant 0 : index
    %97 = vector.load %arg11[%c0_39, %c0_40] : memref<1x32xf32, #tpu.memory_space<vmem>>, vector<1x32xf32>
    %c0_41 = arith.constant 0 : index
    %c0_42 = arith.constant 0 : index
    %98 = vector.load %arg12[%c0_41, %c0_42] : memref<1x32xf32, #tpu.memory_space<vmem>>, vector<1x32xf32>
    %99 = arith.addf %96, %4 : vector<8x32xf32>
    %cst_43 = arith.constant dense<0.000000e+00> : vector<8xf32>
    %100 = vector.multi_reduction <add>, %99, %cst_43 [1] : vector<8x32xf32> to vector<8xf32>
    %101 = vector.shape_cast %100 : vector<8xf32> to vector<8x1xf32>
    %cst_44 = arith.constant 3.200000e+01 : f32
    %102 = vector.broadcast %cst_44 : f32 to vector<8x1xf32>
    %103 = arith.divf %101, %102 : vector<8x1xf32>
    %104 = vector.broadcast %103 : vector<8x1xf32> to vector<8x32xf32>
    %105 = arith.subf %99, %104 : vector<8x32xf32>
    %106 = arith.mulf %105, %105 : vector<8x32xf32>
    %cst_45 = arith.constant dense<0.000000e+00> : vector<8xf32>
    %107 = vector.multi_reduction <add>, %106, %cst_45 [1] : vector<8x32xf32> to vector<8xf32>
    %108 = vector.shape_cast %107 : vector<8xf32> to vector<8x1xf32>
    %cst_46 = arith.constant 3.200000e+01 : f32
    %109 = vector.broadcast %cst_46 : f32 to vector<8x1xf32>
    %110 = arith.divf %108, %109 : vector<8x1xf32>
    %111 = vector.broadcast %103 : vector<8x1xf32> to vector<8x32xf32>
    %112 = arith.subf %99, %111 : vector<8x32xf32>
    %cst_47 = arith.constant 9.99999974E-6 : f32
    %113 = vector.broadcast %cst_47 : f32 to vector<8x1xf32>
    %114 = arith.addf %110, %113 : vector<8x1xf32>
    %115 = math.rsqrt %114 : vector<8x1xf32>
    %116 = vector.broadcast %115 : vector<8x1xf32> to vector<8x32xf32>
    %117 = arith.mulf %112, %116 : vector<8x32xf32>
    %118 = vector.broadcast %97 : vector<1x32xf32> to vector<8x32xf32>
    %119 = arith.mulf %117, %118 : vector<8x32xf32>
    %120 = vector.broadcast %98 : vector<1x32xf32> to vector<8x32xf32>
    %121 = arith.addf %119, %120 : vector<8x32xf32>
    %c0_48 = arith.constant 0 : index
    %c0_49 = arith.constant 0 : index
    %c0_50 = arith.constant 0 : index
    %122 = vector.load %arg13[%c0_48, %c0_49, %c0_50] : memref<1x8x32xf32, #tpu.memory_space<vmem>>, vector<1x8x32xf32>
    %123 = vector.shape_cast %122 : vector<1x8x32xf32> to vector<8x32xf32>
    %124 = vector.shape_cast %121 : vector<8x32xf32> to vector<1x8x32xf32>
    tpu.vector_store %arg13[%c0_48, %c0_49, %c0_50], %124 {strides = array<i32>} : memref<1x8x32xf32, #tpu.memory_space<vmem>>, vector<1x8x32xf32>,
    return
  }
  func.func @transform_0(%arg0: i32, %arg1: i32) -> (i32, i32, i32) {
    %c0_i32 = arith.constant 0 : i32
    %c0_i32_0 = arith.constant 0 : i32
    return %arg0, %arg1, %c0_i32 : i32, i32, i32
  }
  func.func @transform_1(%arg0: i32, %arg1: i32) -> (i32, i32, i32) {
    %c0_i32 = arith.constant 0 : i32
    %c0_i32_0 = arith.constant 0 : i32
    %c0_i32_1 = arith.constant 0 : i32
    return %arg0, %c0_i32, %c0_i32_0 : i32, i32, i32
  }
  func.func @transform_2(%arg0: i32, %arg1: i32) -> (i32, i32, i32) {
    %c0_i32 = arith.constant 0 : i32
    %c0_i32_0 = arith.constant 0 : i32
    return %arg0, %arg1, %c0_i32 : i32, i32, i32
  }
  func.func @transform_3(%arg0: i32, %arg1: i32) -> (i32, i32) {
    %c0_i32 = arith.constant 0 : i32
    %c0_i32_0 = arith.constant 0 : i32
    %c0_i32_1 = arith.constant 0 : i32
    return %c0_i32, %c0_i32_0 : i32, i32
  }
  func.func @transform_4(%arg0: i32, %arg1: i32) -> (i32, i32) {
    %c0_i32 = arith.constant 0 : i32
    %c0_i32_0 = arith.constant 0 : i32
    %c0_i32_1 = arith.constant 0 : i32
    return %c0_i32, %c0_i32_0 : i32, i32
  }
  func.func @transform_5(%arg0: i32, %arg1: i32) -> (i32, i32) {
    %c0_i32 = arith.constant 0 : i32
    %c0_i32_0 = arith.constant 0 : i32
    %c0_i32_1 = arith.constant 0 : i32
    return %c0_i32, %c0_i32_0 : i32, i32
  }
  func.func @transform_6(%arg0: i32, %arg1: i32) -> (i32, i32) {
    %c0_i32 = arith.constant 0 : i32
    %c0_i32_0 = arith.constant 0 : i32
    %c0_i32_1 = arith.constant 0 : i32
    return %c0_i32, %c0_i32_0 : i32, i32
  }
  func.func @transform_7(%arg0: i32, %arg1: i32) -> (i32, i32) {
    %c0_i32 = arith.constant 0 : i32
    %c0_i32_0 = arith.constant 0 : i32
    %c0_i32_1 = arith.constant 0 : i32
    return %c0_i32, %c0_i32_0 : i32, i32
  }
  func.func @transform_8(%arg0: i32, %arg1: i32) -> (i32, i32) {
    %c0_i32 = arith.constant 0 : i32
    %c0_i32_0 = arith.constant 0 : i32
    %c0_i32_1 = arith.constant 0 : i32
    return %c0_i32, %c0_i32_0 : i32, i32
  }
  func.func @transform_9(%arg0: i32, %arg1: i32) -> (i32, i32) {
    %c0_i32 = arith.constant 0 : i32
    %c0_i32_0 = arith.constant 0 : i32
    %c0_i32_1 = arith.constant 0 : i32
    return %c0_i32, %c0_i32_0 : i32, i32
  }
  func.func @transform_10(%arg0: i32, %arg1: i32) -> (i32, i32) {
    %c0_i32 = arith.constant 0 : i32
    %c0_i32_0 = arith.constant 0 : i32
    %c0_i32_1 = arith.constant 0 : i32
    return %c0_i32, %c0_i32_0 : i32, i32
  }
  func.func @transform_11(%arg0: i32, %arg1: i32) -> (i32, i32, i32) {
    %c0_i32 = arith.constant 0 : i32
    %c0_i32_0 = arith.constant 0 : i32
    return %arg0, %arg1, %c0_i32 : i32, i32, i32
  }
}

module attributes {stable_mosaic.version = 11 : i64} {
  func.func @_ffn_ln_kernel(%arg0: i32, %arg1: i32, %arg2: memref<1x8x32xf32, #tpu.memory_space<vmem>>, %arg3: memref<32x64xbf16, #tpu.memory_space<vmem>>, %arg4: memref<1x64xf32, #tpu.memory_space<vmem>>, %arg5: memref<64x32xbf16, #tpu.memory_space<vmem>>, %arg6: memref<1x32xf32, #tpu.memory_space<vmem>>, %arg7: memref<1x32xf32, #tpu.memory_space<vmem>>, %arg8: memref<1x32xf32, #tpu.memory_space<vmem>>, %arg9: memref<1x8x32xf32, #tpu.memory_space<vmem>>) attributes {dimension_semantics = [#tpu.dimension_semantics<parallel>, #tpu.dimension_semantics<parallel>], iteration_bounds = array<i64: 2, 1>, scalar_prefetch = 0 : i64, scratch_operands = 0 : i64, tpu.core_type = #tpu.core_type<tc>, window_params = [{transform_indices = @transform_0, window_bounds = array<i64: 1, 8, 32>}, {pipeline_mode = #tpu.pipeline_mode<synchronous>, transform_indices = @transform_1, window_bounds = array<i64: 32, 64>}, {pipeline_mode = #tpu.pipeline_mode<synchronous>, transform_indices = @transform_2, window_bounds = array<i64: 1, 64>}, {pipeline_mode = #tpu.pipeline_mode<synchronous>, transform_indices = @transform_3, window_bounds = array<i64: 64, 32>}, {pipeline_mode = #tpu.pipeline_mode<synchronous>, transform_indices = @transform_4, window_bounds = array<i64: 1, 32>}, {pipeline_mode = #tpu.pipeline_mode<synchronous>, transform_indices = @transform_5, window_bounds = array<i64: 1, 32>}, {pipeline_mode = #tpu.pipeline_mode<synchronous>, transform_indices = @transform_6, window_bounds = array<i64: 1, 32>}, {transform_indices = @transform_7, window_bounds = array<i64: 1, 8, 32>}]} {
    %c0 = arith.constant 0 : index
    %c0_0 = arith.constant 0 : index
    %c0_1 = arith.constant 0 : index
    %0 = vector.load %arg2[%c0, %c0_0, %c0_1] : memref<1x8x32xf32, #tpu.memory_space<vmem>>, vector<1x8x32xf32>
    %1 = vector.shape_cast %0 : vector<1x8x32xf32> to vector<8x32xf32>
    %2 = arith.truncf %1 : vector<8x32xf32> to vector<8x32xbf16>
    %c0_2 = arith.constant 0 : index
    %c0_3 = arith.constant 0 : index
    %3 = vector.load %arg3[%c0_2, %c0_3] : memref<32x64xbf16, #tpu.memory_space<vmem>>, vector<32x64xbf16>
    %cst = arith.constant dense<0.000000e+00> : vector<8x64xf32>
    %4 = tpu.matmul %2, %3, %cst {dimension_numbers = #tpu.dot_dimension_numbers<[1], [0], [0], [1], [0, 0, 1, 1], [], []>} : vector<8x32xbf16>, vector<32x64xbf16>, vector<8x64xf32> -> vector<8x64xf32>
    %c0_4 = arith.constant 0 : index
    %c0_5 = arith.constant 0 : index
    %5 = vector.load %arg4[%c0_4, %c0_5] : memref<1x64xf32, #tpu.memory_space<vmem>>, vector<1x64xf32>
    %6 = vector.broadcast %5 : vector<1x64xf32> to vector<8x64xf32>
    %7 = arith.addf %4, %6 : vector<8x64xf32>
    %cst_6 = arith.constant 0.000000e+00 : f32
    %8 = vector.broadcast %cst_6 : f32 to vector<8x64xf32>
    %9 = arith.maximumf %7, %8 : vector<8x64xf32>
    %10 = arith.truncf %9 : vector<8x64xf32> to vector<8x64xbf16>
    %c0_7 = arith.constant 0 : index
    %c0_8 = arith.constant 0 : index
    %11 = vector.load %arg5[%c0_7, %c0_8] : memref<64x32xbf16, #tpu.memory_space<vmem>>, vector<64x32xbf16>
    %cst_9 = arith.constant dense<0.000000e+00> : vector<8x32xf32>
    %12 = tpu.matmul %10, %11, %cst_9 {dimension_numbers = #tpu.dot_dimension_numbers<[1], [0], [0], [1], [0, 0, 1, 1], [], []>} : vector<8x64xbf16>, vector<64x32xbf16>, vector<8x32xf32> -> vector<8x32xf32>
    %c0_10 = arith.constant 0 : index
    %c0_11 = arith.constant 0 : index
    %13 = vector.load %arg6[%c0_10, %c0_11] : memref<1x32xf32, #tpu.memory_space<vmem>>, vector<1x32xf32>
    %14 = vector.broadcast %13 : vector<1x32xf32> to vector<8x32xf32>
    %15 = arith.addf %12, %14 : vector<8x32xf32>
    %c0_12 = arith.constant 0 : index
    %c0_13 = arith.constant 0 : index
    %16 = vector.load %arg7[%c0_12, %c0_13] : memref<1x32xf32, #tpu.memory_space<vmem>>, vector<1x32xf32>
    %c0_14 = arith.constant 0 : index
    %c0_15 = arith.constant 0 : index
    %17 = vector.load %arg8[%c0_14, %c0_15] : memref<1x32xf32, #tpu.memory_space<vmem>>, vector<1x32xf32>
    %18 = arith.addf %15, %1 : vector<8x32xf32>
    %cst_16 = arith.constant dense<0.000000e+00> : vector<8xf32>
    %19 = vector.multi_reduction <add>, %18, %cst_16 [1] : vector<8x32xf32> to vector<8xf32>
    %20 = vector.shape_cast %19 : vector<8xf32> to vector<8x1xf32>
    %cst_17 = arith.constant 3.200000e+01 : f32
    %21 = vector.broadcast %cst_17 : f32 to vector<8x1xf32>
    %22 = arith.divf %20, %21 : vector<8x1xf32>
    %23 = vector.broadcast %22 : vector<8x1xf32> to vector<8x32xf32>
    %24 = arith.subf %18, %23 : vector<8x32xf32>
    %25 = arith.mulf %24, %24 : vector<8x32xf32>
    %cst_18 = arith.constant dense<0.000000e+00> : vector<8xf32>
    %26 = vector.multi_reduction <add>, %25, %cst_18 [1] : vector<8x32xf32> to vector<8xf32>
    %27 = vector.shape_cast %26 : vector<8xf32> to vector<8x1xf32>
    %cst_19 = arith.constant 3.200000e+01 : f32
    %28 = vector.broadcast %cst_19 : f32 to vector<8x1xf32>
    %29 = arith.divf %27, %28 : vector<8x1xf32>
    %30 = vector.broadcast %22 : vector<8x1xf32> to vector<8x32xf32>
    %31 = arith.subf %18, %30 : vector<8x32xf32>
    %cst_20 = arith.constant 9.99999974E-6 : f32
    %32 = vector.broadcast %cst_20 : f32 to vector<8x1xf32>
    %33 = arith.addf %29, %32 : vector<8x1xf32>
    %34 = math.rsqrt %33 : vector<8x1xf32>
    %35 = vector.broadcast %34 : vector<8x1xf32> to vector<8x32xf32>
    %36 = arith.mulf %31, %35 : vector<8x32xf32>
    %37 = vector.broadcast %16 : vector<1x32xf32> to vector<8x32xf32>
    %38 = arith.mulf %36, %37 : vector<8x32xf32>
    %39 = vector.broadcast %17 : vector<1x32xf32> to vector<8x32xf32>
    %40 = arith.addf %38, %39 : vector<8x32xf32>
    %c0_21 = arith.constant 0 : index
    %c0_22 = arith.constant 0 : index
    %c0_23 = arith.constant 0 : index
    %41 = vector.load %arg9[%c0_21, %c0_22, %c0_23] : memref<1x8x32xf32, #tpu.memory_space<vmem>>, vector<1x8x32xf32>
    %42 = vector.shape_cast %41 : vector<1x8x32xf32> to vector<8x32xf32>
    %43 = vector.shape_cast %40 : vector<8x32xf32> to vector<1x8x32xf32>
    tpu.vector_store %arg9[%c0_21, %c0_22, %c0_23], %43 {strides = array<i32>} : memref<1x8x32xf32, #tpu.memory_space<vmem>>, vector<1x8x32xf32>,
    return
  }
  func.func @transform_0(%arg0: i32, %arg1: i32) -> (i32, i32, i32) {
    %c0_i32 = arith.constant 0 : i32
    %c0_i32_0 = arith.constant 0 : i32
    return %arg0, %arg1, %c0_i32 : i32, i32, i32
  }
  func.func @transform_1(%arg0: i32, %arg1: i32) -> (i32, i32) {
    %c0_i32 = arith.constant 0 : i32
    %c0_i32_0 = arith.constant 0 : i32
    %c0_i32_1 = arith.constant 0 : i32
    return %c0_i32, %c0_i32_0 : i32, i32
  }
  func.func @transform_2(%arg0: i32, %arg1: i32) -> (i32, i32) {
    %c0_i32 = arith.constant 0 : i32
    %c0_i32_0 = arith.constant 0 : i32
    %c0_i32_1 = arith.constant 0 : i32
    return %c0_i32, %c0_i32_0 : i32, i32
  }
  func.func @transform_3(%arg0: i32, %arg1: i32) -> (i32, i32) {
    %c0_i32 = arith.constant 0 : i32
    %c0_i32_0 = arith.constant 0 : i32
    %c0_i32_1 = arith.constant 0 : i32
    return %c0_i32, %c0_i32_0 : i32, i32
  }
  func.func @transform_4(%arg0: i32, %arg1: i32) -> (i32, i32) {
    %c0_i32 = arith.constant 0 : i32
    %c0_i32_0 = arith.constant 0 : i32
    %c0_i32_1 = arith.constant 0 : i32
    return %c0_i32, %c0_i32_0 : i32, i32
  }
  func.func @transform_5(%arg0: i32, %arg1: i32) -> (i32, i32) {
    %c0_i32 = arith.constant 0 : i32
    %c0_i32_0 = arith.constant 0 : i32
    %c0_i32_1 = arith.constant 0 : i32
    return %c0_i32, %c0_i32_0 : i32, i32
  }
  func.func @transform_6(%arg0: i32, %arg1: i32) -> (i32, i32) {
    %c0_i32 = arith.constant 0 : i32
    %c0_i32_0 = arith.constant 0 : i32
    %c0_i32_1 = arith.constant 0 : i32
    return %c0_i32, %c0_i32_0 : i32, i32
  }
  func.func @transform_7(%arg0: i32, %arg1: i32) -> (i32, i32, i32) {
    %c0_i32 = arith.constant 0 : i32
    %c0_i32_0 = arith.constant 0 : i32
    return %arg0, %arg1, %c0_i32 : i32, i32, i32
  }
}

</mosaic_0001>

<bundles_post_ra>
// kernel: decoder_layer.5
= control target key start
LH: loop header
LB: loop body
LE: loop exit
PB: predicated region body
PF: predicated region fallthrough
CT: control target
= control target key end

     0   :  { %12 = vsyncpa [#allocation3], 0  ;;  %s942_s0 = inlined_call_operand.vmem [shape: f32[2,8,32], index: 0, kind: input, shape index: {}]   ;;  %s943_s1 = inlined_call_operand.vmem [shape: bf16[32,64], index: 1, kind: input, shape index: {}]   ;;  %s944_s2 = inlined_call_operand.vmem [shape: f32[1,64], index: 2, kind: input, shape index: {}]   ;;  %s945_s3 = inlined_call_operand.vmem [shape: bf16[64,32], index: 3, kind: input, shape index: {}]   ;;  %s946_s4 = inlined_call_operand.vmem [shape: f32[1,32], index: 4, kind: input, shape index: {}]   ;;  %s947_s5 = inlined_call_operand.vmem [shape: f32[1,32], index: 5, kind: input, shape index: {}]   ;;  %s948_s6 = inlined_call_operand.vmem [shape: f32[1,32], index: 6, kind: input, shape index: {}]   ;;  %s949_s7 = inlined_call_operand.hbm [shape: f32[2,8,32], index: 7, kind: output, shape index: {}]  }
   0x1   :  { %14 = vsyncpa [#allocation3 + $0x1], 0  ;;  %s809_s24 = smov 0   ;;  %s811_s25 = smov 0  }
   0x2   :  { %s813_s26 = smov 0   ;;  %s815_s27 = smov 0  }
   0x3   :  { %s817_s28 = smov 0   ;;  %s819_s29 = smov 0  }
   0x4 LB: > { %s572_s30 = sadd.s32 4294967295, %s764_s29   ;;  %s573_s8 = sadd.s32 4294967294, %s764_s29   ;;  %s764_s29 = sphi %s819_s29, %s20_s29   ;;  %s760_s28 = sphi %s817_s28, %s956_s28   ;;  %s756_s27 = sphi %s815_s27, %s955_s27   ;;  %s752_s26 = sphi %s813_s26, %s954_s26   ;;  %s748_s25 = sphi %s811_s25, %s953_s25   ;;  %s744_s24 = sphi %s809_s24, %s952_s24  }
   0x5   : > { %s32_s9 = sadd.s32 1, %s760_s28  ;;  %s195_s10 = sadd.s32 1, %s752_s26 }
   0x6   : > { %p34_p0 = scmp.ge.s32.totalorder %s32_s9, 2  ;;  %p205_p1 = scmp.ne.s32.totalorder %s752_s26, %s748_s25 }
   0x7   : > { %p206_p2 = scmp.eq.s32.totalorder %s572_s30, 1  ;;  %p211_p3 = scmp.ne.s32.totalorder %s748_s25, %s744_s24 }
   0x8   : > { %s958_s9 = smov (%p34_p0, %s32_s9), 0  ;;  %p212_p5 = scmp.eq.s32.totalorder %s573_s8, 1 }
   0x9   : > { %p849_p4 = por %p206_p2, %p205_p1  ;;  %s190_s12 = ssub.s32 %s760_s28, %s958_s9 }
   0xa   : > { %p576_p6 = scmp.ge.s32.totalorder %s764_s29, 1  ;;  %p193_p7 = scmp.eq.s32.totalorder %s190_s12, 0 }
   0xb   : > { %p856_p8 = por %p212_p5, %p211_p3  ;;  %p258_p9 = scmp.lt.s32.totalorder %s764_s29, 3 }
   0xc   : > { %s862_s14 = scalar_select %p193_p7, %s752_s26, %s195_s10  }
   0xd   : > { %p259_p10 = pnand %p576_p6, %p258_p9 }
   0xe   : > { %p292_p11 = scmp.lt.s32.totalorder (!%p259_p10), %s756_s27, 1  ;;  %s289_s23 = sand.u32 (!%p259_p10), 1, %s748_s25  }
   0xf   : > { %262 = sbr.rel (%p259_p10) target bundleno = 746 (0x2ea), region = 48  ;;  %s592_s16 = sshll.u32 (!%p259_p10), %s756_s27, 7 }
  0x10   : > { %s487_s22 = scalar_lea.sflag (!%p259_p10), [#allocation3], %s289_s23  ;;  %s768_s10 = smov (!%p259_p10), [#allocation2]  }
  0x14   : > { %v680_v0 = vld [vmem:[%s943_s1 + $0x8] sm:$0xff]   ;;  %v766_v1 = vmov 0.0   ;;  %v681_v2 = vld [vmem:[%s943_s1] sm:$0xff]   ;;  %vm767_vm0 = vmmov 0   ;;  %v682_v3 = vld [vmem:[%s945_s3 + $0x18] sm:$0xff]   ;;  %s293_s21 = scalar_select %p292_p11, %s756_s27, 1 }
  0x15   : > { %603 = vmatprep.subr.bf16.mxu0 %v766_v1  ;;  %611 = vmatprep.subr.bf16.mxu1 %v766_v1  ;;  %v683_v4 = vld [vmem:[%s945_s3 + $0x10] sm:$0xff]   ;;  %vm325_vm1 = vcmask 261120   ;;  %v684_v7 = vld [vmem:[%s945_s3 + $0x8] sm:$0xff]   ;;  %v685_v8 = vld [vmem:[%s945_s3] sm:$0xff]   ;;  %vm410_vm2 = vcmask 523264  }
  0x16   : > { %604 = vmatpush3.bf16.msra.mxu0 %v680_v0  ;;  %607 = vmatprep.mubr.msk.bf16.mxu0 %vm767_vm0, %v766_v1  ;;  %s578_s30 = sshll.u32 %s293_s21, 3  ;;  %v579_v9 = vld [vmem:[%s944_s2] ss:$0 sm:$0xff]  ;;  %s499_s21 = scalar_lea.hbm %s949_s7, %s592_s16 }
  0x17   : > { %605 = vmatprep.subr.bf16.mxu0 %v766_v1  ;;  %619 = vmatprep.mubr.msk.bf16.mxu1 %vm767_vm0, %v766_v1  ;;  %s298_s12 = scalar_lea.vmem %s942_s0, %s578_s30  ;;  %v583_v17 = vld [vmem:[%s946_s4] ss:$0 sm:$0xff]  ;;  %s577_s30 = sshll.u32 %s289_s23, 3 }
  0x18   : > { %612 = vmatpush3.bf16.msra.mxu1 %v682_v3  ;;  %v300_v5 = vld [vmem:[%s298_s12] sm:$0xff]  ;;  %s291_s17 = scalar_lea.vmem [#allocation2], %s577_s30  ;;  %s692_s12 = sshll.u32 %s768_s10, 4  ;;  %s693_s12 = int_to_ptr.vmem [resolvable:$false] %s692_s12 }
  0x19   : > { %613 = vmatprep.subr.bf16.mxu1 %v766_v1  ;;  %v301_v6 = vpack.c.bf16 %v300_v5, %v300_v5  ;;  %v589_v34 = vld [vmem:[%s947_s5] ss:$0 sm:$0xff]  ;;  %s501_s18 = sshll.u32 %s291_s17, 4  ;;  %s694_s27 = scalar_lea.vmem %s693_s12, 256  ;;  %s502_s18 = int_to_ptr.vmem [resolvable:$true] %s501_s18 }
  0x1a   : > { %606 = vmatpush3.bf16.msra.mxu0 %v681_v2  ;;  %v590_v36 = vld [vmem:[%s948_s6] ss:$0 sm:$0xff]  ;;  %s688_s8 = scalar_lea.vmem %s502_s18, 128  ;;  %p695_p1 = scmp.lt.s32.totalorder %s502_s18, %s693_s12 }
  0x1b   : > { %p689_p12 = scmp.ne.s32.totalorder %s502_s18, %s688_s8  ;;  %p696_p2 = scmp.lt.s32.totalorder %s694_s27, %s688_s8 }
  0x1c   : > { %614 = vmatpush3.bf16.msra.mxu1 %v683_v4 }
  0x1d   : > { %615 = vmatprep.subr.bf16.mxu1 %v766_v1  ;;  %608 = vmatmul.mubr.msk.bf16.vlgmr.msra.gmra.mxu0 %vm325_vm1, %v301_v6  ;;  %p690_p13 = pnand %p689_p12, %p849_p4  ;;  %p697_p3 = por %p696_p2, %p695_p1 }
  0x1f   : > { %p691_p0 = pneg %p690_p13 }
  0x20   : > { %616 = vmatpush3.bf16.msra.mxu1 %v684_v7 }
  0x21   : > { %617 = vmatprep.subr.bf16.mxu1 %v766_v1  ;;  %p698_p5 = pnand %p697_p3, %p691_p0 }
  0x24   : > { %618 = vmatpush3.bf16.msra.mxu1 %v685_v8 }
  0xdd   : > { %v363_v10 = vpop.f32.mrf.mxu0 }
  0xde   : > { %v364_v11 = vadd.f32 %v579_v9, %v363_v10 }
  0xdf   : > { %v609_v12 = vpop.f32.mrf.mxu0 }
  0xe0   : > { %v369_v13 = vmax.f32 %v364_v11, 0.0 }
  0xe1   : > { %v366_v14 = vpop.f32.mrf.mxu0 }
  0xe2   : > { %v370_v15 = vpack.c.bf16 %v369_v13, %v369_v13 }
  0xe3   : > { %v610_v16 = vpop.f32.mrf.mxu0 }
  0xe4   : > { %620 = vmatmul.mubr.msk.bf16.vlgmr.msra.gmra.mxu1 %vm410_vm2, %v370_v15 }
 0x1a4   : > { %v448_v18 = vpop.f32.mrf.mxu1 }
 0x1a5   : > { %v449_v19 = vadd.f32 %v583_v17, %v448_v18 }
 0x1a6   : > { %v621_v20 = vpop.f32.mrf.mxu1 }
 0x1a7   : > { %v456_v21 = vadd.f32 %v449_v19, %v300_v5 }
 0x1a8   : > { %v451_v22 = vpop.f32.mrf.mxu1 }
 0x1a9   : > { %v457_v23 = vsel %vm325_vm1, %v456_v21, 0.0 }
 0x1aa   : > { %458 = vadd.xlane.f32.xlu0 %v457_v23  ;;  %v622_v24 = vpop.f32.mrf.mxu1 }
 0x233   : > { %v459_v25 = vpop.xlane.xlu0 %458 }
 0x234   : > { %v461_v26 = vmul.f32 0.03125, %v459_v25 }
 0x236   : > { %v462_v27 = vsub.f32 %v456_v21, %v461_v26 }
 0x238   : > { %v463_v28 = vmul.f32 %v462_v27, %v462_v27 }
 0x23a   : > { %v464_v29 = vsel %vm325_vm1, %v463_v28, 0.0 }
 0x23b   : > { %465 = vadd.xlane.f32.xlu0 %v464_v29 }
 0x2c4   : > { %v466_v30 = vpop.xlane.xlu0 %465 }
 0x2c5   : > { %v467_v31 = vmul.f32 0.03125, %v466_v30 }
 0x2c7   : > { %v468_v32 = vadd.f32 1e-05, %v467_v31 }
 0x2c9   : > { %686 = vrsqrt.f32 %v468_v32 }
 0x2d6   : > { %v687_v33 = vpop.eup %686 }
 0x2d7   : > { %v470_v35 = vmul.f32 %v687_v33, %v462_v27 }
 0x2d9   : > { %v477_v37 = vmul.f32 %v589_v34, %v470_v35 }
 0x2db   : > { %v484_v38 = vadd.f32 %v590_v36, %v477_v37 }
 0x2dd   : > { %485 = vst.msk [vmem:[%s291_s17] sm:$0xff] %vm325_vm1, %v484_v38 }
 0x2de   : > { %701 = shalt.err (!%p698_p5)
}
 0x2df   : > { %s702_s30 = scalar_lea.hbm %s499_s21, 128  ;;  %s706_s16 = scalar_lea.hbm %s949_s7, 256 }
 0x2e0   : > { %p703_p6 = scmp.ne.s32.totalorder %s499_s21, %s702_s30  ;;  %p707_p10 = scmp.lt.s32.totalorder %s499_s21, %s949_s7 }
 0x2e1   : > { %p708_p11 = scmp.lt.s32.totalorder %s706_s16, %s702_s30 }
 0x2e2   : > { %p704_p7 = pnand %p703_p6, %p849_p4 }
 0x2e3   : > { %p709_p12 = por %p708_p11, %p707_p10 }
 0x2e4   : > { %p705_p9 = pneg %p704_p7 }
 0x2e6   : > { %p710_p13 = pnand %p709_p12, %p705_p9 }
 0x2e8   : > { %713 = shalt.err (!%p710_p13)
}
 0x2e9   : > { %623 = dma.vmem_to_hbm [thread:$0]  (%p849_p4), %s502_s18, 128, %s499_s21, %s487_s22  }
 0x2ea PF: > { %p629_p0 = scmp.ge.s32.totalorder %s764_s29, 2  ;;  %s513_s20 = sand.u32 1, %s744_s24  }
 0x2eb   : > { %s514_s8 = scalar_lea.sflag [#allocation3], %s513_s20 }
 0x2ec   : > { %p626_p1 = pnand %p629_p0, %p856_p8 }
 0x2ee   : > { %p627_p2 = pneg %p626_p1 }
 0x2f0   : > { %739 = dma.done.wait (%p627_p2), %s514_s8, 128  }
 0x2f1   : > { %741 = vsyncadd (%p627_p2), %s514_s8, 4294967168  ;;  %s20_s29 = sadd.s32 1, %s764_s29   ;;  %s952_s24 = smov %s748_s25 }
 0x2f2   : > { %p17_p3 = scmp.ge.s32.totalorder %s20_s29, 4   ;;  %s953_s25 = smov %s752_s26 }
 0x2f3   : > { %s954_s26 = smov %s862_s14  ;;  %s955_s27 = smov %s760_s28 }
 0x2f4   : > { %s956_s28 = smov %s958_s9  ;;  %19 = sbr.rel (!%p17_p3) target bundleno = 4 (0x4), region = 83 }
 0x2f9   :  { %519 = vsyncpa [#allocation3], 1 }
 0x2fa   :  { %521 = vsyncpa [#allocation3 + $0x1], 1 }

// kernel: decoder_layer.3
= control target key start
LH: loop header
LB: loop body
LE: loop exit
PB: predicated region body
PF: predicated region fallthrough
CT: control target
= control target key end

     0   :  { %16 = vsyncpa [#allocation4], 0  ;;  %s2067_s0 = inlined_call_operand.vmem [shape: f32[2,8,32], index: 0, kind: input, shape index: {}, may-alias: {0,1}]   ;;  %s2068_s1 = inlined_call_operand.vmem [shape: f32[2,8,32], index: 1, kind: input, shape index: {}, may-alias: {0,1}]   ;;  %s2069_s2 = inlined_call_operand.vmem [shape: bf16[2,8,8], index: 2, kind: input, shape index: {}]   ;;  %s2070_s3 = inlined_call_operand.vmem [shape: bf16[32,32], index: 3, kind: input, shape index: {}]   ;;  %s2071_s4 = inlined_call_operand.vmem [shape: f32[1,32], index: 4, kind: input, shape index: {}]   ;;  %s2072_s5 = inlined_call_operand.hbm [shape: bf16[32,64], index: 5, kind: input, shape index: {}]   ;;  %s2073_s6 = inlined_call_operand.hbm [shape: f32[1,64], index: 6, kind: input, shape index: {}]   ;;  %s2074_s7 = inlined_call_operand.hbm [shape: bf16[32,32], index: 7, kind: input, shape index: {}]   ;;  %s2075_s8 = inlined_call_operand.hbm [shape: f32[1,32], index: 8, kind: input, shape index: {}]   ;;  %s2076_s9 = inlined_call_operand.vmem [shape: f32[1,32], index: 9, kind: input, shape index: {}]   ;;  %s2077_s10 = inlined_call_operand.vmem [shape: f32[1,32], index: 10, kind: input, shape index: {}]   ;;  %s2078_s11 = inlined_call_operand.vmem [shape: f32[2,8,32], index: 11, kind: output, shape index: {}]  }
   0x1   :  { %17 = vsyncpa [#allocation6], 0 }
   0x2   :  { %18 = vsyncpa [#allocation9], 0  ;;  %s1836_s17 = smov 0   ;;  %s1838_s18 = smov 0  }
   0x3   :  { %s1840_s19 = smov 0  }
   0x4 LB: > { %s1757_s20 = smov [#allocation5]   ;;  %s1373_s22 = sadd.s32 4294967295, %s1755_s19   ;;  %s1755_s19 = sphi %s1840_s19, %s24_s19   ;;  %s1751_s18 = sphi %s1838_s18, %s2086_s18   ;;  %s1747_s17 = sphi %s1836_s17, %s2085_s17  }
   0x5   : > { %s351_s21 = sshll.u32 %s1757_s20, 4  ;;  %p1375_p0 = scmp.ge.s32.totalorder %s1755_s19, 1  ;;  %s352_s21 = int_to_ptr.vmem [resolvable:$true] %s351_s21 }
   0x6   : > { %p319_p1 = scmp.lt.s32.totalorder %s1755_s19, 3  ;;  %p1854_p2 = scmp.eq.s32.totalorder %s1373_s22, 0 }
   0x7   : > { %s36_s25 = sadd.s32 1, %s1751_s18  ;;  %s1758_s28 = smov [#allocation3]  }
   0x8   : > { %p1858_p3 = pnand %p1375_p0, %p319_p1  ;;  %p1871_p6 = scmp.ge.s32.totalorder %s36_s25, 2 }
   0x9   : > { %s337_s29 = sshll.u32 %s1758_s28, 4  ;;  %s1628_s30 = scalar_lea.vmem %s352_s21, 16  ;;  %s338_s29 = int_to_ptr.vmem [resolvable:$true] %s337_s29 }
   0xa   : > { %p1528_p4 = pneg %p1858_p3  ;;  %p1629_p8 = scmp.ne.s32.totalorder %s352_s21, %s1628_s30 }
   0xb   : > { %s1635_s12 = scalar_lea.vmem %s352_s21, 32  ;;  %p1636_p11 = scmp.lt.s32.totalorder %s352_s21, %s352_s21 }
   0xc   : > { %p1867_p5 = pnand %p1854_p2, %p1528_p4  ;;  %p1637_p12 = scmp.lt.s32.totalorder %s1635_s12, %s1628_s30 }
   0xe   : > { %p1619_p7 = pneg %p1867_p5  ;;  %p1638_p13 = por %p1637_p12, %p1636_p11 }
  0x10   : > { %p1631_p9 = pnand %p1629_p8, %p1619_p7 }
  0x12   : > { %p1632_p10 = pneg %p1631_p9 }
  0x14   : > { %p1639_p0 = pnand %p1638_p13, %p1632_p10 }
  0x16   : > { %1642 = shalt.err (!%p1639_p0)
}
  0x17   : > { %1534 = dma.hbm_to_vmem [thread:$0]  (!%p1867_p5), %s2073_s6, 16, %s352_s21, [#allocation6]  }
  0x18   : > { %s2088_s25 = smov (%p1871_p6, %s36_s25), 0  ;;  %s1654_s15 = scalar_lea.vmem %s338_s29, 256 }
  0x19   : > { %p1655_p1 = scmp.ne.s32.totalorder %s338_s29, %s1654_s15  ;;  %p1662_p9 = scmp.lt.s32.totalorder %s338_s29, %s338_s29 }
  0x1a   : > { %p1663_p10 = scmp.lt.s32.totalorder %s1654_s15, %s1654_s15 }
  0x1b   : > { %p1657_p4 = pnand %p1655_p1, %p1619_p7 }
  0x1c   : > { %p1664_p11 = por %p1663_p10, %p1662_p9 }
  0x1d   : > { %p1658_p8 = pneg %p1657_p4 }
  0x1f   : > { %p1665_p12 = pnand %p1664_p11, %p1658_p8 }
  0x21   : > { %1668 = shalt.err (!%p1665_p12)
}
  0x22   : > { %s1759_s16 = smov 64   ;;  %s1760_s20 = smov 4  }
  0x23   : > { %1531 = dma.hbm_to_vmem [thread:$0]  (!%p1867_p5), %s2072_s5, 256, %s338_s29, [#allocation4], %s1759_s16, %s1759_s16, %s1760_s20  }
  0x24   : > { %s1761_s27 = smov [#allocation7]   ;;  %s1762_s30 = smov [#allocation8]  }
  0x25   : > { %s361_s28 = sshll.u32 %s1761_s27, 4  ;;  %s375_s12 = sshll.u32 %s1762_s30, 4  ;;  %s362_s28 = int_to_ptr.vmem [resolvable:$true] %s361_s28  ;;  %s376_s12 = int_to_ptr.vmem [resolvable:$true] %s375_s12 }
  0x26   : > { %s1680_s13 = scalar_lea.vmem %s362_s28, 256  ;;  %p1688_p1 = scmp.lt.s32.totalorder %s362_s28, %s362_s28 }
  0x27   : > { %p1681_p6 = scmp.ne.s32.totalorder %s362_s28, %s1680_s13  ;;  %p1689_p4 = scmp.lt.s32.totalorder %s1680_s13, %s1680_s13 }
  0x29   : > { %p1683_p13 = pnand %p1681_p6, %p1619_p7  ;;  %p1690_p8 = por %p1689_p4, %p1688_p1 }
  0x2b   : > { %p1684_p0 = pneg %p1683_p13 }
  0x2d   : > { %p1691_p9 = pnand %p1690_p8, %p1684_p0 }
  0x2f   : > { %1694 = shalt.err (!%p1691_p9)
}
  0x30   : > { %1537 = dma.hbm_to_vmem [thread:$0]  (!%p1867_p5), %s2074_s7, 256, %s362_s28, [#allocation6], %s1759_s16, %s1759_s16, %s1760_s20  }
  0x31   : > { %s1706_s15 = scalar_lea.vmem %s376_s12, 16  ;;  %s1713_s21 = scalar_lea.vmem %s376_s12, 32 }
  0x32   : > { %p1707_p10 = scmp.ne.s32.totalorder %s376_s12, %s1706_s15  ;;  %p1714_p6 = scmp.lt.s32.totalorder %s376_s12, %s376_s12 }
  0x33   : > { %p1715_p13 = scmp.lt.s32.totalorder %s1713_s21, %s1706_s15 }
  0x34   : > { %p1709_p11 = pnand %p1707_p10, %p1619_p7 }
  0x35   : > { %p1716_p1 = por %p1715_p13, %p1714_p6 }
  0x36   : > { %p1710_p12 = pneg %p1709_p11 }
  0x38   : > { %p1717_p0 = pnand %p1716_p1, %p1710_p12 }
  0x3a   : > { %1720 = shalt.err (!%p1717_p0)
}
  0x3b   : > { %1540 = dma.hbm_to_vmem [thread:$0]  (!%p1867_p5), %s2075_s8, 16, %s376_s12, [#allocation9]  }
  0x3c   : > { %421 = sbr.rel (%p1858_p3) target bundleno = 1757 (0x6dd), region = 64 }
  0x41   : > { %1734 = dma.done.wait (%p1854_p2), [#allocation4], 256  }
  0x42   : > { %1736 = vsyncadd (%p1854_p2), [#allocation4], 4294967040 }
  0x43   : > { %1738 = dma.done.wait (%p1854_p2), [#allocation6], 272  }
  0x44   : > { %1740 = vsyncadd (%p1854_p2), [#allocation6], 4294967024 }
  0x45   : > { %1742 = dma.done.wait (%p1854_p2), [#allocation9], 16  }
  0x46   : > { %1744 = vsyncadd (%p1854_p2), [#allocation9], 4294967280  ;;  %p488_p3 = scmp.lt.s32.totalorder %s1747_s17, 1  ;;  %v1763_v0 = vmov 0.0   ;;  %vm1764_vm0 = vmmov 0   ;;  %v1592_v1 = vld [vmem:[#allocation3 + $0x8] sm:$0xff]  }
  0x47   : > { %1440 = vmatprep.subr.bf16.mxu0 %v1763_v0  ;;  %1444 = vmatprep.mubr.msk.bf16.mxu0 %vm1764_vm0, %v1763_v0  ;;  %v1593_v2 = vld [vmem:[#allocation3] sm:$0xff]   ;;  %vm545_vm1 = vcmask 261120   ;;  %v1390_v9 = vld [vmem:[#allocation5] ss:$0 sm:$0xff]  ;;  %vm590_vm2 = vcmask 519168   ;;  %vm666_vm3 = vcmask 64512  }
  0x48   : > { %s2090_s17 = smov (!%p488_p3, %s1747_s17), 1  ;;  %1448 = vmatprep.subr.bf16.mxu1 %v1763_v0  ;;  %1452 = vmatprep.mubr.msk.bf16.mxu1 %vm1764_vm0, %v1763_v0  ;;  %v1594_v4 = vld [vmem:[%s2070_s3 + $0x8] sm:$0xff]   ;;  %v1595_v5 = vld [vmem:[%s2070_s3] sm:$0xff]   ;;  %s1765_s22 = smov 112   ;;  %v1768_v36 = vmov 0   ;;  %vm737_vm6 = vcmask 1043456  }
  0x49   : > { %s1938_s23 = sshll.u32 %s2090_s17, 3  ;;  %1441 = vmatpush3.bf16.msra.mxu0 %v1592_v1  ;;  %1449 = vmatpush3.bf16.msra.mxu1 %v1594_v4  ;;  %v1394_v19 = vld [vmem:[%s2071_s4] ss:$0 sm:$0xff]  ;;  %s1766_s27 = smov 120   ;;  %vm1128_vm7 = vcmask 130048   ;;  %vm1130_vm8 = vcmask 195584  }
  0x4a   : > { %s498_s16 = scalar_lea.vmem %s2068_s1, %s1938_s23  ;;  %s494_s30 = scalar_lea.vmem %s2067_s0, %s1938_s23  ;;  %1442 = vmatprep.subr.bf16.mxu0 %v1763_v0  ;;  %1450 = vmatprep.subr.bf16.mxu1 %v1763_v0 }
  0x4b   : > { %v520_v3 = vld [vmem:[%s498_s16] sm:$0xff]  ;;  %s1767_s24 = smov 104   ;;  %s1388_s26 = sshll.u32 %s2090_s17, 2 }
  0x4c   : > { %v1955_v6 = vld [vmem:[%s494_s30] sm:$0xff]  ;;  %v521_v7 = vpack.c.bf16 %v520_v3, %v520_v3  ;;  %s505_s28 = scalar_lea.vmem %s2069_s2, %s1388_s26  ;;  %s1769_s17 = smov 96  }
  0x4d   : > { %1443 = vmatpush3.bf16.msra.mxu0 %v1593_v2  ;;  %v593_v8 = vpack.c.bf16 %v1955_v6, %v1955_v6  ;;  %1451 = vmatpush3.bf16.msra.mxu1 %v1595_v5  ;;  %v662_v35 = vld [vmem:[%s505_s28] sm:$0xf]  ;;  %s1770_s30 = smov 80   ;;  %s1771_s12 = smov 72  }
  0x4e   : > { %1456 = vmatprep.subr.bf16.mxu0 %v1763_v0  ;;  %1462 = vmatprep.subr.bf16.mxu1 %v1763_v0  ;;  %vm663_vm4 = vcmp.eq.bf16.partialorder %v662_v35, 0  ;;  %s1772_s13 = smov 88   ;;  %s1773_s14 = smov 8  }
  0x4f   : > { %v713_v37 = vsel %vm663_vm4, 65537, %v1768_v36  ;;  %s1774_s29 = smov 16   ;;  %s1775_s15 = smov 24  }
  0x50   : > { %1445 = vmatmul.mubr.msk.bf16.vlgmr.msra.gmra.mxu0 %vm545_vm1, %v521_v7  ;;  %1453 = vmatmul.mubr.msk.bf16.vlgmr.msra.gmra.mxu1 %vm545_vm1, %v593_v8  ;;  %v714_v38 = vunpack.c.l.b16 %v713_v37  ;;  %s512_s20 = scalar_lea.vmem %s2078_s11, %s1938_s23 }
  0x51   : > { %1458 = vmatprep.mubr.msk.bf16.mxu0 %vm1764_vm0, %v1763_v0  ;;  %1464 = vmatprep.mubr.msk.bf16.mxu1 %vm1764_vm0, %v1763_v0 }
  0x52   : > { %vm2000_vm5 = vcmp.ne.s32.totalorder %v714_v38, 0 }
 0x110   : > { %v583_v10 = vpop.f32.mrf.mxu0  ;;  %v655_v14 = vpop.f32.mrf.mxu1 }
 0x111   : > { %v584_v11 = vadd.f32 %v1390_v9, %v583_v10  ;;  %v656_v21 = vadd.f32 %v1394_v19, %v655_v14 }
 0x112   : > { %v1446_v12 = vpop.f32.mrf.mxu0  ;;  %v1454_v16 = vpop.f32.mrf.mxu1 }
 0x113   : > { %v589_v13 = vpack.c.bf16 %v584_v11, %v584_v11  ;;  %v665_v25 = vpack.c.bf16 %v656_v21, %v656_v21 }
 0x114   : > { %v586_v15 = vpop.f32.mrf.mxu0  ;;  %v658_v18 = vpop.f32.mrf.mxu1 }
 0x115   : > { %591 = vst.msk [vmem:[#allocation2] sm:$0xf] %vm590_vm2, %v589_v13 }
 0x116   : > { %v1447_v17 = vpop.f32.mrf.mxu0  ;;  %v1455_v20 = vpop.f32.mrf.mxu1 }
 0x11c   : > { %v661_v22 = vld [vmem:[#allocation2] sm:$0xf] }
 0x11d   : > { %v671_v23 = vsel %vm666_vm3, %v661_v22, 0  ;;  %v1972_v24 = vcombine.low %v661_v22, %v661_v22 }
 0x11e   : > { %1457 = vmatpush3.bf16.xpose.msra.mxu0 %v671_v23 }
 0x11f   : > { %895 = vrot.lane.b32.xlu1 %v1972_v24, %s1765_s22  ;;  %784 = vrot.lane.b32.xlu0 %v1972_v24, %s1766_s27 }
 0x120   : > { %1468 = vmatprep.subr.bf16.mxu0 %v1763_v0 }
 0x123   : > { %893 = vrot.lane.b32.xlu1 %v665_v25, %s1765_s22  ;;  %782 = vrot.lane.b32.xlu0 %v665_v25, %s1766_s27 }
 0x125   : > { %1459 = vmatmul.mubr.msk.bf16.vlgmr.msra.gmra.mxu0 %vm666_vm3, %v665_v25 }
 0x126   : > { %1470 = vmatprep.mubr.msk.bf16.mxu0 %vm1764_vm0, %v1763_v0 }
 0x127   : > { %1004 = vrot.lane.b32.xlu1 %v665_v25, %s1767_s24  ;;  %1006 = vrot.lane.b32.xlu0 %v1972_v24, %s1767_s24 }
 0x191   : > { %v785_v26 = vpop.permute.xlu0 %784  ;;  %v896_v28 = vpop.permute.xlu1 %895 }
 0x192   : > { %v790_v27 = vsel %vm666_vm3, %v785_v26, 0  ;;  %v901_v30 = vsel %vm666_vm3, %v896_v28, 0 }
 0x193   : > { %1469 = vmatpush3.bf16.xpose.msra.mxu0 %v790_v27 }
 0x194   : > { %1480 = vmatprep.subr.bf16.mxu0 %v1763_v0 }
 0x195   : > { %v783_v29 = vpop.permute.xlu0 %782  ;;  %v894_v32 = vpop.permute.xlu1 %893 }
 0x199   : > { %v1007_v31 = vpop.permute.xlu0 %1006  ;;  %v1005_v34 = vpop.permute.xlu1 %1004 }
 0x19a   : > { %1471 = vmatmul.mubr.msk.bf16.vlgmr.msra.gmra.mxu0 %vm666_vm3, %v783_v29  ;;  %v1012_v33 = vsel %vm666_vm3, %v1007_v31, 0 }
 0x19b   : > { %1481 = vmatpush3.bf16.xpose.msra.mxu0 %v901_v30  ;;  %1482 = vmatprep.mubr.msk.bf16.mxu0 %vm1764_vm0, %v1763_v0 }
 0x19c   : > { %1492 = vmatprep.subr.bf16.mxu0 %v1763_v0 }
 0x1a2   : > { %1483 = vmatmul.mubr.msk.bf16.vlgmr.msra.gmra.mxu0 %vm666_vm3, %v894_v32 }
 0x1a3   : > { %1493 = vmatpush3.bf16.xpose.msra.mxu0 %v1012_v33  ;;  %1494 = vmatprep.mubr.msk.bf16.mxu0 %vm1764_vm0, %v1763_v0 }
 0x1a4   : > { %1504 = vmatprep.subr.bf16.mxu0 %v1763_v0 }
 0x1aa   : > { %1495 = vmatmul.mubr.msk.bf16.vlgmr.msra.gmra.mxu0 %vm666_vm3, %v1005_v34 }
 0x1ab   : > { %1508 = vmatprep.mubr.msk.bf16.mxu0 %vm1764_vm0, %v1763_v0 }
 0x1e5   : > { %v707_v40 = vpop.f32.mrf.mxu0 }
 0x1e6   : > { %v716_v41 = vsel %vm2000_vm5, -10000.0, %v707_v40 }
 0x1e7   : > { %v1460_v42 = vpop.f32.mrf.mxu0  ;;  %v717_v43 = vsel %vm666_vm3, %v716_v41, -inf }
 0x1e8   : > { %718 = vmax.xlane.f32.xlu0 %v717_v43 }
 0x1e9   : > { %v710_v44 = vpop.f32.mrf.mxu0 }
 0x1eb   : > { %v1461_v45 = vpop.f32.mrf.mxu0 }
 0x25a   : > { %v826_v46 = vpop.f32.mrf.mxu0 }
 0x25b   : > { %v832_v47 = vsel %vm2000_vm5, -10000.0, %v826_v46 }
 0x25c   : > { %v1472_v48 = vpop.f32.mrf.mxu0  ;;  %v833_v49 = vsel %vm666_vm3, %v832_v47, -inf }
 0x25d   : > { %834 = vmax.xlane.f32.xlu1 %v833_v49 }
 0x25e   : > { %v829_v50 = vpop.f32.mrf.mxu0 }
 0x25f   : > { %v1597_v50 = vld [vmem:[#allocation7 + $0x8] sm:$0xff]  }
 0x260   : > { %v1473_v51 = vpop.f32.mrf.mxu0  ;;  %1505 = vmatpush3.bf16.msra.mxu0 %v1597_v50 }
 0x261   : > { %1506 = vmatprep.subr.bf16.mxu0 %v1763_v0 }
 0x262   : > { %v937_v52 = vpop.f32.mrf.mxu0 }
 0x263   : > { %v943_v53 = vsel %vm2000_vm5, -10000.0, %v937_v52 }
 0x264   : > { %v1484_v54 = vpop.f32.mrf.mxu0  ;;  %v944_v55 = vsel %vm666_vm3, %v943_v53, -inf }
 0x265   : > { %945 = vmax.xlane.f32.xlu0 %v944_v55 }
 0x266   : > { %v940_v56 = vpop.f32.mrf.mxu0 }
 0x268   : > { %v1485_v57 = vpop.f32.mrf.mxu0 }
 0x26a   : > { %v1048_v58 = vpop.f32.mrf.mxu0 }
 0x26b   : > { %v1054_v59 = vsel %vm2000_vm5, -10000.0, %v1048_v58 }
 0x26c   : > { %v1496_v60 = vpop.f32.mrf.mxu0  ;;  %v1055_v61 = vsel %vm666_vm3, %v1054_v59, -inf }
 0x26d   : > { %1056 = vmax.xlane.f32.xlu0 %v1055_v61 }
 0x26e   : > { %v1051_v62 = vpop.f32.mrf.mxu0 }
 0x270   : > { %v1497_v63 = vpop.f32.mrf.mxu0 }
 0x271   : > { %v719_v1 = vpop.xlane.xlu0 %718 }
 0x272   : > { %v720_v2 = vsub.f32 %v716_v41, %v719_v1 }
 0x274   : > { %v721_v3 = vmul.f32 1.442695, %v720_v2 }
 0x276   : > { %1599 = vpow2.f32 %v721_v3 }
 0x283   : > { %v1600_v4 = vpop.eup %1599 }
 0x284   : > { %v723_v5 = vsel %vm666_vm3, %v1600_v4, 0.0 }
 0x285   : > { %724 = vadd.xlane.f32.xlu1 %v723_v5 }
 0x296   : > { %732 = vrot.lane.b32.xlu1 %v1972_v24, %s1769_s17 }
 0x2e6   : > { %v835_v7 = vpop.xlane.xlu1 %834 }
 0x2e7   : > { %v836_v8 = vsub.f32 %v832_v47, %v835_v7 }
 0x2e9   : > { %v837_v9 = vmul.f32 1.442695, %v836_v8  ;;  %v1407_v8 = vld [vmem:[#allocation8] ss:$0 sm:$0xff] }
 0x2eb   : > { %1601 = vpow2.f32 %v837_v9 }
 0x2ee   : > { %v946_v10 = vpop.xlane.xlu0 %945 }
 0x2ef   : > { %v947_v11 = vsub.f32 %v943_v53, %v946_v10  ;;  %v1598_v53 = vld [vmem:[#allocation7] sm:$0xff]  }
 0x2f0   : > { %1507 = vmatpush3.bf16.msra.mxu0 %v1598_v53 }
 0x2f1   : > { %v948_v12 = vmul.f32 1.442695, %v947_v11 }
 0x2f3   : > { %1603 = vpow2.f32 %v948_v12 }
 0x2f6   : > { %v1057_v13 = vpop.xlane.xlu0 %1056 }
 0x2f7   : > { %v1058_v14 = vsub.f32 %v1054_v59, %v1057_v13 }
 0x2f8   : > { %v1602_v15 = vpop.eup %1601 }
 0x2f9   : > { %v1059_v16 = vmul.f32 1.442695, %v1058_v14  ;;  %v839_v17 = vsel %vm666_vm3, %v1602_v15, 0.0 }
 0x2fa   : > { %840 = vadd.xlane.f32.xlu0 %v839_v17 }
 0x2fb   : > { %1605 = vpow2.f32 %v1059_v16 }
 0x300   : > { %v1604_v18 = vpop.eup %1603 }
 0x301   : > { %v950_v19 = vsel %vm666_vm3, %v1604_v18, 0.0 }
 0x302   : > { %951 = vadd.xlane.f32.xlu1 %v950_v19 }
 0x308   : > { %v1606_v20 = vpop.eup %1605 }
 0x309   : > { %v1061_v21 = vsel %vm666_vm3, %v1606_v20, 0.0 }
 0x30a   : > { %1062 = vadd.xlane.f32.xlu0 %v1061_v21 }
 0x30e   : > { %v725_v22 = vpop.xlane.xlu1 %724 }
 0x30f   : > { %1607 = vrcp.f32 %v725_v22 }
 0x312   : > { %v733_v23 = vpop.permute.xlu1 %732 }
 0x313   : > { %v739_v25 = vsel %vm737_vm6, %v733_v23, 0  ;;  %956 = vrot.lane.b32.xlu1 %v1972_v24, %s1770_s30 }
 0x314   : > { %1463 = vmatpush3.bf16.msra.mxu1 %v739_v25 }
 0x315   : > { %1474 = vmatprep.subr.bf16.mxu1 %v1763_v0 }
 0x317   : > { %1067 = vrot.lane.b32.xlu1 %v1972_v24, %s1771_s12 }
 0x31c   : > { %v1608_v26 = vpop.eup %1607 }
 0x31d   : > { %v727_v27 = vmul.f32 %v1608_v26, %v1600_v4 }
 0x31f   : > { %v728_v28 = vpack.c.bf16 %v727_v27, %v727_v27  ;;  %v1412_v27 = vld [vmem:[%s2077_s10] ss:$0 sm:$0xff] }
 0x320   : > { %845 = vrot.lane.b32.xlu0 %v1972_v24, %s1772_s13 }
 0x321   : > { %1465 = vmatmul.mubr.msk.bf16.vlgmr.msra.gmra.mxu1 %vm666_vm3, %v728_v28 }
 0x322   : > { %1476 = vmatprep.mubr.msk.bf16.mxu1 %vm1764_vm0, %v1763_v0 }
 0x383   : > { %v841_v29 = vpop.xlane.xlu0 %840 }
 0x384   : > { %1609 = vrcp.f32 %v841_v29 }
 0x38b   : > { %v952_v30 = vpop.xlane.xlu1 %951 }
 0x38c   : > { %1611 = vrcp.f32 %v952_v30 }
 0x38f   : > { %v957_v36 = vpop.permute.xlu1 %956 }
 0x390   : > { %v962_v38 = vsel %vm737_vm6, %v957_v36, 0 }
 0x391   : > { %v1610_v31 = vpop.eup %1609 }
 0x392   : > { %v843_v33 = vmul.f32 %v1610_v31, %v1602_v15 }
 0x393   : > { %v1063_v32 = vpop.xlane.xlu0 %1062  ;;  %v1068_v40 = vpop.permute.xlu1 %1067 }
 0x394   : > { %1613 = vrcp.f32 %v1063_v32  ;;  %v844_v37 = vpack.c.bf16 %v843_v33, %v843_v33  ;;  %v1073_v43 = vsel %vm737_vm6, %v1068_v40, 0 }
 0x397   : > { %v846_v34 = vpop.permute.xlu0 %845 }
 0x398   : > { %v851_v35 = vsel %vm737_vm6, %v846_v34, 0 }
 0x399   : > { %1475 = vmatpush3.bf16.msra.mxu1 %v851_v35  ;;  %v1612_v24 = vpop.eup %1611 }
 0x39a   : > { %1486 = vmatprep.subr.bf16.mxu1 %v1763_v0  ;;  %v954_v39 = vmul.f32 %v1612_v24, %v1604_v18 }
 0x39c   : > { %1477 = vmatmul.mubr.msk.bf16.vlgmr.msra.gmra.mxu1 %vm666_vm3, %v844_v37  ;;  %v955_v41 = vpack.c.bf16 %v954_v39, %v954_v39 }
 0x39d   : > { %1487 = vmatpush3.bf16.msra.mxu1 %v962_v38  ;;  %1488 = vmatprep.mubr.msk.bf16.mxu1 %vm1764_vm0, %v1763_v0 }
 0x39e   : > { %1498 = vmatprep.subr.bf16.mxu1 %v1763_v0 }
 0x3a1   : > { %v1614_v42 = vpop.eup %1613 }
 0x3a2   : > { %v1065_v44 = vmul.f32 %v1614_v42, %v1606_v20 }
 0x3a4   : > { %1489 = vmatmul.mubr.msk.bf16.vlgmr.msra.gmra.mxu1 %vm666_vm3, %v955_v41  ;;  %v1066_v45 = vpack.c.bf16 %v1065_v44, %v1065_v44 }
 0x3a5   : > { %1499 = vmatpush3.bf16.msra.mxu1 %v1073_v43  ;;  %1500 = vmatprep.mubr.msk.bf16.mxu1 %vm1764_vm0, %v1763_v0 }
 0x3ac   : > { %1501 = vmatmul.mubr.msk.bf16.vlgmr.msra.gmra.mxu1 %vm666_vm3, %v1066_v45 }
 0x3e1   : > { %v775_v46 = vpop.f32.mrf.mxu1 }
 0x3e3   : > { %v1466_v47 = vpop.f32.mrf.mxu1 }
 0x3e5   : > { %v778_v48 = vpop.f32.mrf.mxu1 }
 0x3e7   : > { %v1467_v49 = vpop.f32.mrf.mxu1 }
 0x45c   : > { %v887_v51 = vpop.f32.mrf.mxu1 }
 0x45d   : > { %1116 = vrot.lane.b32.xlu0 %v887_v51, %s1773_s14 }
 0x45e   : > { %v1478_v52 = vpop.f32.mrf.mxu1 }
 0x460   : > { %v890_v54 = vpop.f32.mrf.mxu1 }
 0x462   : > { %v1479_v55 = vpop.f32.mrf.mxu1 }
 0x464   : > { %v998_v56 = vpop.f32.mrf.mxu1 }
 0x465   : > { %1120 = vrot.lane.b32.xlu1 %v998_v56, %s1774_s29 }
 0x466   : > { %v1490_v57 = vpop.f32.mrf.mxu1 }
 0x468   : > { %v1001_v58 = vpop.f32.mrf.mxu1 }
 0x46a   : > { %v1491_v59 = vpop.f32.mrf.mxu1 }
 0x46c   : > { %v1109_v60 = vpop.f32.mrf.mxu1 }
 0x46d   : > { %1124 = vrot.lane.b32.xlu0 %v1109_v60, %s1775_s15 }
 0x46e   : > { %v1502_v61 = vpop.f32.mrf.mxu1 }
 0x470   : > { %v1112_v62 = vpop.f32.mrf.mxu1 }
 0x472   : > { %v1503_v0 = vpop.f32.mrf.mxu1 }
 0x4cf   : > { %v1117_v63 = vpop.permute.xlu0 %1116 }
 0x4d0   : > { %v1127_v2 = vsel %vm666_vm3, %v775_v46, %v1117_v63 }
 0x4d7   : > { %v1121_v1 = vpop.permute.xlu1 %1120 }
 0x4d8   : > { %v1129_v3 = vsel %vm1128_vm7, %v1127_v2, %v1121_v1 }
 0x4df   : > { %v1125_v4 = vpop.permute.xlu0 %1124 }
 0x4e0   : > { %v1131_v5 = vsel %vm1130_vm8, %v1129_v3, %v1125_v4 }
 0x4e1   : > { %v1132_v7 = vpack.c.bf16 %v1131_v5, %v1131_v5 }
 0x4e3   : > { %1509 = vmatmul.mubr.msk.bf16.vlgmr.msra.gmra.mxu0 %vm545_vm1, %v1132_v7 }
 0x5a3   : > { %v1192_v9 = vpop.f32.mrf.mxu0 }
 0x5a4   : > { %v1193_v10 = vadd.f32 %v1407_v8, %v1192_v9 }
 0x5a5   : > { %v1510_v11 = vpop.f32.mrf.mxu0 }
 0x5a6   : > { %v1200_v12 = vadd.f32 %v1193_v10, %v1955_v6  ;;  %v1411_v6 = vld [vmem:[%s2076_s9] ss:$0 sm:$0xff] }
 0x5a7   : > { %v1195_v13 = vpop.f32.mrf.mxu0 }
 0x5a8   : > { %v1201_v14 = vsel %vm545_vm1, %v1200_v12, 0.0 }
 0x5a9   : > { %1202 = vadd.xlane.f32.xlu1 %v1201_v14  ;;  %v1511_v15 = vpop.f32.mrf.mxu0 }
 0x632   : > { %v1203_v16 = vpop.xlane.xlu1 %1202 }
 0x633   : > { %v1205_v17 = vmul.f32 0.03125, %v1203_v16 }
 0x635   : > { %v1206_v18 = vsub.f32 %v1200_v12, %v1205_v17 }
 0x637   : > { %v1207_v19 = vmul.f32 %v1206_v18, %v1206_v18 }
 0x639   : > { %v1208_v20 = vsel %vm545_vm1, %v1207_v19, 0.0 }
 0x63a   : > { %1209 = vadd.xlane.f32.xlu0 %v1208_v20 }
 0x6c3   : > { %v1210_v21 = vpop.xlane.xlu0 %1209 }
 0x6c4   : > { %v1211_v22 = vmul.f32 0.03125, %v1210_v21 }
 0x6c6   : > { %v1212_v23 = vadd.f32 1e-05, %v1211_v22 }
 0x6c8   : > { %1615 = vrsqrt.f32 %v1212_v23 }
 0x6d5   : > { %v1616_v25 = vpop.eup %1615 }
 0x6d6   : > { %v1214_v26 = vmul.f32 %v1616_v25, %v1206_v18 }
 0x6d8   : > { %v1221_v28 = vmul.f32 %v1411_v6, %v1214_v26 }
 0x6da   : > { %v1228_v29 = vadd.f32 %v1412_v27, %v1221_v28 }
 0x6dc   : > { %1229 = vst.msk [vmem:[%s512_s20] sm:$0xff] %vm545_vm1, %v1228_v29 }
 0x6dd PF: > { %s24_s19 = sadd.s32 1, %s1755_s19   ;;  %s2085_s17 = smov %s1751_s18 }
 0x6de   : > { %p21_p2 = scmp.ge.s32.totalorder %s24_s19, 4   ;;  %s2086_s18 = smov %s2088_s25 }
 0x6e0   :  { %23 = sbr.rel (!%p21_p2) target bundleno = 4 (0x4), region = 121 }
 0x6e5   :  { %1255 = vsyncpa [#allocation4], 1 }
 0x6e6   :  { %1257 = vsyncpa [#allocation4 + $0x1], 1 }
 0x6e7   :  { %1258 = vsyncpa [#allocation6], 1 }
 0x6e8   :  { %1259 = vsyncpa [#allocation9], 1 }

// kernel: decoder_layer.4
= control target key start
LH: loop header
LB: loop body
LE: loop exit
PB: predicated region body
PF: predicated region fallthrough
CT: control target
= control target key end

     0   :  { %s1579_s17 = smov 0   ;;  %s1581_s18 = smov 0   ;;  %s1751_s0 = inlined_call_operand.vmem [shape: f32[2,8,32], index: 0, kind: input, shape index: {}]   ;;  %s1752_s1 = inlined_call_operand.vmem [shape: f32[2,16,32], index: 1, kind: input, shape index: {}]   ;;  %s1753_s2 = inlined_call_operand.vmem [shape: bf16[2,8,16], index: 2, kind: input, shape index: {}]   ;;  %s1754_s3 = inlined_call_operand.vmem [shape: bf16[32,32], index: 3, kind: input, shape index: {}]   ;;  %s1755_s4 = inlined_call_operand.vmem [shape: f32[1,32], index: 4, kind: input, shape index: {}]   ;;  %s1756_s5 = inlined_call_operand.vmem [shape: bf16[32,64], index: 5, kind: input, shape index: {}]   ;;  %s1757_s6 = inlined_call_operand.vmem [shape: f32[1,64], index: 6, kind: input, shape index: {}]   ;;  %s1758_s7 = inlined_call_operand.vmem [shape: bf16[32,32], index: 7, kind: input, shape index: {}]   ;;  %s1759_s8 = inlined_call_operand.vmem [shape: f32[1,32], index: 8, kind: input, shape index: {}]   ;;  %s1760_s9 = inlined_call_operand.vmem [shape: f32[1,32], index: 9, kind: input, shape index: {}]   ;;  %s1761_s10 = inlined_call_operand.vmem [shape: f32[1,32], index: 10, kind: input, shape index: {}]   ;;  %s1762_s11 = inlined_call_operand.vmem [shape: f32[2,8,32], index: 11, kind: output, shape index: {}]  }
   0x1   :  { %s1583_s19 = smov 0  }
   0x2 LB: > { %s33_s20 = sadd.s32 1, %s1500_s18  ;;  %p1287_p0 = scmp.ge.s32.totalorder %s1504_s19, 1  ;;  %s1504_s19 = sphi %s1583_s19, %s21_s19   ;;  %s1500_s18 = sphi %s1581_s18, %s1766_s18   ;;  %s1496_s17 = sphi %s1579_s17, %s1765_s17  }
   0x3   : > { %p35_p1 = scmp.ge.s32.totalorder %s33_s20, 2  ;;  %p379_p2 = scmp.lt.s32.totalorder %s1504_s19, 3 }
   0x5   : > { %s1768_s20 = smov (%p35_p1, %s33_s20), 0  ;;  %p380_p3 = pnand %p1287_p0, %p379_p2 }
   0x6   : > { %p435_p4 = scmp.lt.s32.totalorder (!%p380_p3), %s1496_s17, 1  ;;  %s1508_s26 = smov (!%p380_p3), 112  }
   0x7   : > { %383 = sbr.rel (%p380_p3) target bundleno = 1699 (0x6a3), region = 64  ;;  %s1509_s27 = smov (!%p380_p3), 120  }
   0x8   : > { %s1510_s28 = smov (!%p380_p3), 104   ;;  %s1512_s15 = smov (!%p380_p3), 96  }
   0x9   : > { %s1513_s16 = smov (!%p380_p3), 80   ;;  %s1515_s22 = smov (!%p380_p3), 88  }
   0xa   : > { %s1516_s25 = smov (!%p380_p3), 8  }
   0xc   : > { %v1457_v0 = vld [vmem:[%s1756_s5 + $0x8] sm:$0xff]   ;;  %v1506_v1 = vmov 0.0   ;;  %v1458_v2 = vld [vmem:[%s1756_s5] sm:$0xff]   ;;  %vm1507_vm0 = vmmov 0   ;;  %s1770_s17 = smov (!%p435_p4, %s1496_s17), 1  ;;  %vm494_vm1 = vcmask 261120  }
   0xd   : > { %1348 = vmatprep.subr.bf16.mxu0 %v1506_v1  ;;  %1356 = vmatprep.subr.bf16.mxu1 %v1506_v1  ;;  %v1459_v3 = vld [vmem:[%s1754_s3 + $0x8] sm:$0xff]   ;;  %v1460_v4 = vld [vmem:[%s1754_s3] sm:$0xff]   ;;  %s1320_s29 = sshll.u32 %s1770_s17, 4  ;;  %s1288_s30 = sshll.u32 %s1770_s17, 3  ;;  %vm547_vm2 = vcmask 519168   ;;  %vm630_vm3 = vcmask 64512  }
   0xe   : > { %1349 = vmatpush3.bf16.msra.mxu0 %v1457_v0  ;;  %1352 = vmatprep.mubr.msk.bf16.mxu0 %vm1507_vm0, %v1506_v1  ;;  %s446_s14 = scalar_lea.vmem %s1752_s1, %s1320_s29  ;;  %s441_s21 = scalar_lea.vmem %s1751_s0, %s1288_s30  ;;  %v1293_v10 = vld [vmem:[%s1757_s6] ss:$0 sm:$0xff]  ;;  %v1511_v38 = vmov 0   ;;  %vm681_vm6 = vcmask 130048   ;;  %vm1082_vm7 = vcmask 195584  }
   0xf   : > { %1350 = vmatprep.subr.bf16.mxu0 %v1506_v1  ;;  %1360 = vmatprep.mubr.msk.bf16.mxu1 %vm1507_vm0, %v1506_v1  ;;  %v468_v5 = vld [vmem:[%s446_s14] sm:$0xff]  ;;  %v469_v6 = vld [vmem:[%s446_s14 + $0x8] sm:$0xff]  ;;  %s1291_s29 = sshll.u32 %s1770_s17, 2  ;;  %s460_s24 = scalar_lea.vmem %s1762_s11, %s1288_s30 }
  0x10   : > { %1357 = vmatpush3.bf16.msra.mxu1 %v1459_v3  ;;  %v1630_v7 = vld [vmem:[%s441_s21] sm:$0xff]  ;;  %v470_v8 = vpack.c.bf16 %v469_v6, %v468_v5  ;;  %s453_s14 = scalar_lea.vmem %s1753_s2, %s1291_s29  ;;  %s1514_s21 = smov 72  }
  0x11   : > { %1358 = vmatprep.subr.bf16.mxu1 %v1506_v1  ;;  %v551_v9 = vpack.c.bf16 %v1630_v7, %v1630_v7  ;;  %v1299_v23 = vld [vmem:[%s1755_s4] ss:$0 sm:$0xff]  ;;  %s1518_s29 = smov 24  }
  0x12   : > { %1351 = vmatpush3.bf16.msra.mxu0 %v1458_v2  ;;  %v621_v37 = vld [vmem:[%s453_s14] sm:$0xf] }
  0x13   : > { %1364 = vmatprep.subr.bf16.mxu0 %v1506_v1  ;;  %vm622_vm4 = vcmp.eq.bf16.partialorder %v621_v37, 0 }
  0x14   : > { %1359 = vmatpush3.bf16.msra.mxu1 %v1460_v4  ;;  %v677_v39 = vsel %vm622_vm4, 65537, %v1511_v38 }
  0x15   : > { %1370 = vmatprep.subr.bf16.mxu1 %v1506_v1  ;;  %1353 = vmatmul.mubr.msk.bf16.vlgmr.msra.gmra.mxu0 %vm494_vm1, %v470_v8  ;;  %v678_v40 = vunpack.c.l.b16 %v677_v39 }
  0x16   : > { %1366 = vmatprep.mubr.msk.bf16.mxu0 %vm1507_vm0, %v1506_v1 }
  0x17   : > { %1361 = vmatmul.mubr.msk.bf16.vlgmr.msra.gmra.mxu1 %vm494_vm1, %v551_v9  ;;  %vm1677_vm5 = vcmp.ne.s32.totalorder %v678_v40, 0 }
  0x18   : > { %1372 = vmatprep.mubr.msk.bf16.mxu1 %vm1507_vm0, %v1506_v1 }
  0xd5   : > { %v532_v11 = vpop.f32.mrf.mxu0 }
  0xd6   : > { %v533_v12 = vadd.f32 %v1293_v10, %v532_v11 }
  0xd7   : > { %v613_v13 = vpop.f32.mrf.mxu1  ;;  %v1354_v14 = vpop.f32.mrf.mxu0 }
  0xd8   : > { %v1321_v15 = vpack.c.bf16 %v533_v12, %v533_v12  ;;  %v614_v24 = vadd.f32 %v1299_v23, %v613_v13 }
  0xd9   : > { %v1362_v16 = vpop.f32.mrf.mxu1  ;;  %v535_v17 = vpop.f32.mrf.mxu0 }
  0xda   : > { %548 = vst.msk [vmem:[#allocation2] sm:$0xf] %vm547_vm2, %v1321_v15  ;;  %v536_v18 = vadd.f32 %v1293_v10, %v535_v17  ;;  %v624_v26 = vpack.c.bf16 %v614_v24, %v614_v24 }
  0xdb   : > { %v616_v19 = vpop.f32.mrf.mxu1  ;;  %v1355_v20 = vpop.f32.mrf.mxu0 }
  0xdc   : > { %v1322_v21 = vpack.c.bf16 %v536_v18, %v536_v18 }
  0xdd   : > { %v1363_v22 = vpop.f32.mrf.mxu1 }
  0xde   : > { %549 = vst.msk [vmem:[#allocation2 + $0x4] sm:$0xf] %vm547_vm2, %v1322_v21 }
  0xe5   : > { %v1647_v25 = vld [vmem:[#allocation2] sm:$0xff]  }
  0xe6   : > { %852 = vrot.lane.b32.xlu1 %v1647_v25, %s1508_s26  ;;  %743 = vrot.lane.b32.xlu0 %v1647_v25, %s1509_s27  ;;  %v635_v27 = vsel %vm630_vm3, %v1647_v25, 0 }
  0xe7   : > { %1365 = vmatpush3.bf16.xpose.msra.mxu0 %v635_v27 }
  0xe8   : > { %1376 = vmatprep.subr.bf16.mxu0 %v1506_v1 }
  0xea   : > { %850 = vrot.lane.b32.xlu1 %v624_v26, %s1508_s26  ;;  %741 = vrot.lane.b32.xlu0 %v624_v26, %s1509_s27 }
  0xee   : > { %959 = vrot.lane.b32.xlu1 %v624_v26, %s1510_s28  ;;  %961 = vrot.lane.b32.xlu0 %v1647_v25, %s1510_s28  ;;  %s1517_s28 = smov 16  }
  0xef   : > { %1367 = vmatmul.mubr.msk.bf16.vlgmr.msra.gmra.mxu0 %vm630_vm3, %v624_v26 }
  0xf0   : > { %1378 = vmatprep.mubr.msk.bf16.mxu0 %vm1507_vm0, %v1506_v1 }
 0x158   : > { %v744_v28 = vpop.permute.xlu0 %743  ;;  %v853_v30 = vpop.permute.xlu1 %852 }
 0x159   : > { %v749_v29 = vsel %vm630_vm3, %v744_v28, 0  ;;  %v858_v32 = vsel %vm630_vm3, %v853_v30, 0 }
 0x15a   : > { %1377 = vmatpush3.bf16.xpose.msra.mxu0 %v749_v29 }
 0x15b   : > { %1388 = vmatprep.subr.bf16.mxu0 %v1506_v1 }
 0x15c   : > { %v742_v31 = vpop.permute.xlu0 %741  ;;  %v851_v34 = vpop.permute.xlu1 %850 }
 0x160   : > { %v962_v33 = vpop.permute.xlu0 %961  ;;  %v960_v36 = vpop.permute.xlu1 %959 }
 0x161   : > { %1379 = vmatmul.mubr.msk.bf16.vlgmr.msra.gmra.mxu0 %vm630_vm3, %v742_v31  ;;  %v967_v35 = vsel %vm630_vm3, %v962_v33, 0 }
 0x162   : > { %1389 = vmatpush3.bf16.xpose.msra.mxu0 %v858_v32  ;;  %1390 = vmatprep.mubr.msk.bf16.mxu0 %vm1507_vm0, %v1506_v1 }
 0x163   : > { %1400 = vmatprep.subr.bf16.mxu0 %v1506_v1 }
 0x169   : > { %1391 = vmatmul.mubr.msk.bf16.vlgmr.msra.gmra.mxu0 %vm630_vm3, %v851_v34 }
 0x16a   : > { %1401 = vmatpush3.bf16.xpose.msra.mxu0 %v967_v35  ;;  %1402 = vmatprep.mubr.msk.bf16.mxu0 %vm1507_vm0, %v1506_v1 }
 0x16b   : > { %1412 = vmatprep.subr.bf16.mxu0 %v1506_v1 }
 0x171   : > { %1403 = vmatmul.mubr.msk.bf16.vlgmr.msra.gmra.mxu0 %vm630_vm3, %v960_v36 }
 0x172   : > { %1416 = vmatprep.mubr.msk.bf16.mxu0 %vm1507_vm0, %v1506_v1 }
 0x1af   : > { %v671_v42 = vpop.f32.mrf.mxu0 }
 0x1b0   : > { %v680_v43 = vsel %vm1677_vm5, -10000.0, %v671_v42 }
 0x1b1   : > { %v1368_v44 = vpop.f32.mrf.mxu0  ;;  %v682_v45 = vsel %vm681_vm6, %v680_v43, -inf }
 0x1b2   : > { %683 = vmax.xlane.f32.xlu0 %v682_v45 }
 0x1b3   : > { %v674_v46 = vpop.f32.mrf.mxu0 }
 0x1b5   : > { %v1369_v47 = vpop.f32.mrf.mxu0 }
 0x221   : > { %v785_v48 = vpop.f32.mrf.mxu0 }
 0x222   : > { %v791_v49 = vsel %vm1677_vm5, -10000.0, %v785_v48  ;;  %v1462_v48 = vld [vmem:[%s1758_s7 + $0x8] sm:$0xff]  }
 0x223   : > { %v1380_v50 = vpop.f32.mrf.mxu0  ;;  %v792_v51 = vsel %vm681_vm6, %v791_v49, -inf  ;;  %1413 = vmatpush3.bf16.msra.mxu0 %v1462_v48 }
 0x224   : > { %793 = vmax.xlane.f32.xlu1 %v792_v51  ;;  %1414 = vmatprep.subr.bf16.mxu0 %v1506_v1  ;;  %v1463_v51 = vld [vmem:[%s1758_s7] sm:$0xff]  }
 0x225   : > { %v788_v52 = vpop.f32.mrf.mxu0 }
 0x227   : > { %v1381_v53 = vpop.f32.mrf.mxu0  ;;  %1415 = vmatpush3.bf16.msra.mxu0 %v1463_v51 }
 0x229   : > { %v894_v54 = vpop.f32.mrf.mxu0 }
 0x22a   : > { %v900_v55 = vsel %vm1677_vm5, -10000.0, %v894_v54 }
 0x22b   : > { %v1392_v56 = vpop.f32.mrf.mxu0  ;;  %v901_v57 = vsel %vm681_vm6, %v900_v55, -inf }
 0x22c   : > { %902 = vmax.xlane.f32.xlu0 %v901_v57 }
 0x22d   : > { %v897_v58 = vpop.f32.mrf.mxu0 }
 0x22f   : > { %v1393_v59 = vpop.f32.mrf.mxu0 }
 0x231   : > { %v1003_v60 = vpop.f32.mrf.mxu0 }
 0x232   : > { %v1009_v61 = vsel %vm1677_vm5, -10000.0, %v1003_v60 }
 0x233   : > { %v1404_v62 = vpop.f32.mrf.mxu0  ;;  %v1010_v63 = vsel %vm681_vm6, %v1009_v61, -inf }
 0x234   : > { %1011 = vmax.xlane.f32.xlu0 %v1010_v63 }
 0x235   : > { %v1006_v0 = vpop.f32.mrf.mxu0 }
 0x237   : > { %v1405_v2 = vpop.f32.mrf.mxu0 }
 0x23b   : > { %v684_v3 = vpop.xlane.xlu0 %683 }
 0x23c   : > { %v685_v4 = vsub.f32 %v680_v43, %v684_v3 }
 0x23e   : > { %v686_v5 = vmul.f32 1.442695, %v685_v4 }
 0x240   : > { %1464 = vpow2.f32 %v686_v5  ;;  %v1312_v5 = vld [vmem:[%s1759_s8] ss:$0 sm:$0xff] }
 0x24d   : > { %v1465_v6 = vpop.eup %1464 }
 0x24e   : > { %v688_v8 = vsel %vm681_vm6, %v1465_v6, 0.0 }
 0x24f   : > { %689 = vadd.xlane.f32.xlu1 %v688_v8 }
 0x260   : > { %694 = vrot.lane.b32.xlu1 %v1647_v25, %s1512_s15 }
 0x2ad   : > { %v794_v9 = vpop.xlane.xlu1 %793 }
 0x2ae   : > { %v795_v10 = vsub.f32 %v791_v49, %v794_v9 }
 0x2b0   : > { %v796_v11 = vmul.f32 1.442695, %v795_v10 }
 0x2b2   : > { %1466 = vpow2.f32 %v796_v11 }
 0x2b5   : > { %v903_v12 = vpop.xlane.xlu0 %902 }
 0x2b6   : > { %v904_v13 = vsub.f32 %v900_v55, %v903_v12 }
 0x2b8   : > { %v905_v14 = vmul.f32 1.442695, %v904_v13 }
 0x2ba   : > { %1468 = vpow2.f32 %v905_v14 }
 0x2bd   : > { %v1012_v15 = vpop.xlane.xlu0 %1011 }
 0x2be   : > { %v1013_v16 = vsub.f32 %v1009_v61, %v1012_v15 }
 0x2bf   : > { %v1467_v17 = vpop.eup %1466 }
 0x2c0   : > { %v1014_v18 = vmul.f32 1.442695, %v1013_v16  ;;  %v798_v19 = vsel %vm681_vm6, %v1467_v17, 0.0 }
 0x2c1   : > { %799 = vadd.xlane.f32.xlu0 %v798_v19 }
 0x2c2   : > { %1470 = vpow2.f32 %v1014_v18 }
 0x2c7   : > { %v1469_v20 = vpop.eup %1468 }
 0x2c8   : > { %v907_v21 = vsel %vm681_vm6, %v1469_v20, 0.0 }
 0x2c9   : > { %908 = vadd.xlane.f32.xlu1 %v907_v21 }
 0x2cf   : > { %v1471_v22 = vpop.eup %1470 }
 0x2d0   : > { %v1016_v23 = vsel %vm681_vm6, %v1471_v22, 0.0 }
 0x2d1   : > { %1017 = vadd.xlane.f32.xlu0 %v1016_v23 }
 0x2d8   : > { %v690_v24 = vpop.xlane.xlu1 %689 }
 0x2d9   : > { %1472 = vrcp.f32 %v690_v24  ;;  %v1317_v24 = vld [vmem:[%s1761_s10] ss:$0 sm:$0xff] }
 0x2da   : > { %913 = vrot.lane.b32.xlu1 %v1647_v25, %s1513_s16 }
 0x2dc   : > { %v695_v26 = vpop.permute.xlu1 %694 }
 0x2dd   : > { %1371 = vmatpush3.bf16.msra.mxu1 %v695_v26 }
 0x2de   : > { %1022 = vrot.lane.b32.xlu1 %v1647_v25, %s1514_s21  ;;  %1382 = vmatprep.subr.bf16.mxu1 %v1506_v1 }
 0x2e6   : > { %v1473_v27 = vpop.eup %1472 }
 0x2e7   : > { %804 = vrot.lane.b32.xlu0 %v1647_v25, %s1515_s22  ;;  %v692_v28 = vmul.f32 %v1473_v27, %v1465_v6 }
 0x2e9   : > { %v693_v29 = vpack.c.bf16 %v692_v28, %v692_v28 }
 0x2eb   : > { %1373 = vmatmul.mubr.msk.bf16.vlgmr.msra.gmra.mxu1 %vm681_vm6, %v693_v29 }
 0x2ec   : > { %1384 = vmatprep.mubr.msk.bf16.mxu1 %vm1507_vm0, %v1506_v1 }
 0x34a   : > { %v800_v30 = vpop.xlane.xlu0 %799 }
 0x34b   : > { %1474 = vrcp.f32 %v800_v30 }
 0x352   : > { %v909_v31 = vpop.xlane.xlu1 %908 }
 0x353   : > { %1476 = vrcp.f32 %v909_v31 }
 0x356   : > { %v914_v37 = vpop.permute.xlu1 %913 }
 0x358   : > { %v1475_v32 = vpop.eup %1474 }
 0x359   : > { %v802_v34 = vmul.f32 %v1475_v32, %v1467_v17 }
 0x35a   : > { %v1018_v33 = vpop.xlane.xlu0 %1017  ;;  %v1023_v41 = vpop.permute.xlu1 %1022 }
 0x35b   : > { %1478 = vrcp.f32 %v1018_v33  ;;  %v803_v36 = vpack.c.bf16 %v802_v34, %v802_v34 }
 0x35e   : > { %v805_v35 = vpop.permute.xlu0 %804 }
 0x35f   : > { %1383 = vmatpush3.bf16.msra.mxu1 %v805_v35 }
 0x360   : > { %1394 = vmatprep.subr.bf16.mxu1 %v1506_v1  ;;  %v1477_v25 = vpop.eup %1476 }
 0x361   : > { %v911_v38 = vmul.f32 %v1477_v25, %v1469_v20 }
 0x362   : > { %1385 = vmatmul.mubr.msk.bf16.vlgmr.msra.gmra.mxu1 %vm681_vm6, %v803_v36 }
 0x363   : > { %1395 = vmatpush3.bf16.msra.mxu1 %v914_v37  ;;  %1396 = vmatprep.mubr.msk.bf16.mxu1 %vm1507_vm0, %v1506_v1  ;;  %v912_v39 = vpack.c.bf16 %v911_v38, %v911_v38 }
 0x364   : > { %1406 = vmatprep.subr.bf16.mxu1 %v1506_v1 }
 0x368   : > { %v1479_v40 = vpop.eup %1478 }
 0x369   : > { %v1020_v42 = vmul.f32 %v1479_v40, %v1471_v22 }
 0x36a   : > { %1397 = vmatmul.mubr.msk.bf16.vlgmr.msra.gmra.mxu1 %vm681_vm6, %v912_v39 }
 0x36b   : > { %1407 = vmatpush3.bf16.msra.mxu1 %v1023_v41  ;;  %1408 = vmatprep.mubr.msk.bf16.mxu1 %vm1507_vm0, %v1506_v1  ;;  %v1021_v43 = vpack.c.bf16 %v1020_v42, %v1020_v42 }
 0x372   : > { %1409 = vmatmul.mubr.msk.bf16.vlgmr.msra.gmra.mxu1 %vm681_vm6, %v1021_v43 }
 0x3ab   : > { %v734_v44 = vpop.f32.mrf.mxu1 }
 0x3ad   : > { %v1374_v45 = vpop.f32.mrf.mxu1 }
 0x3af   : > { %v737_v46 = vpop.f32.mrf.mxu1 }
 0x3b1   : > { %v1375_v47 = vpop.f32.mrf.mxu1 }
 0x422   : > { %v844_v49 = vpop.f32.mrf.mxu1 }
 0x423   : > { %1069 = vrot.lane.b32.xlu0 %v844_v49, %s1516_s25 }
 0x424   : > { %v1386_v50 = vpop.f32.mrf.mxu1 }
 0x426   : > { %v847_v52 = vpop.f32.mrf.mxu1 }
 0x428   : > { %v1387_v53 = vpop.f32.mrf.mxu1 }
 0x42a   : > { %v953_v54 = vpop.f32.mrf.mxu1 }
 0x42b   : > { %1073 = vrot.lane.b32.xlu1 %v953_v54, %s1517_s28 }
 0x42c   : > { %v1398_v55 = vpop.f32.mrf.mxu1 }
 0x42e   : > { %v956_v56 = vpop.f32.mrf.mxu1 }
 0x430   : > { %v1399_v57 = vpop.f32.mrf.mxu1 }
 0x432   : > { %v1062_v58 = vpop.f32.mrf.mxu1 }
 0x433   : > { %1077 = vrot.lane.b32.xlu0 %v1062_v58, %s1518_s29 }
 0x434   : > { %v1410_v1 = vpop.f32.mrf.mxu1 }
 0x436   : > { %v1065_v59 = vpop.f32.mrf.mxu1 }
 0x438   : > { %v1411_v60 = vpop.f32.mrf.mxu1 }
 0x495   : > { %v1070_v61 = vpop.permute.xlu0 %1069 }
 0x496   : > { %v1080_v63 = vsel %vm630_vm3, %v734_v44, %v1070_v61 }
 0x49d   : > { %v1074_v62 = vpop.permute.xlu1 %1073 }
 0x49e   : > { %v1081_v0 = vsel %vm681_vm6, %v1080_v63, %v1074_v62 }
 0x4a5   : > { %v1078_v2 = vpop.permute.xlu0 %1077 }
 0x4a6   : > { %v1083_v3 = vsel %vm1082_vm7, %v1081_v0, %v1078_v2 }
 0x4a7   : > { %v1084_v4 = vpack.c.bf16 %v1083_v3, %v1083_v3 }
 0x4a9   : > { %1417 = vmatmul.mubr.msk.bf16.vlgmr.msra.gmra.mxu0 %vm494_vm1, %v1084_v4 }
 0x569   : > { %v1144_v6 = vpop.f32.mrf.mxu0 }
 0x56a   : > { %v1145_v8 = vadd.f32 %v1312_v5, %v1144_v6 }
 0x56b   : > { %v1418_v9 = vpop.f32.mrf.mxu0 }
 0x56c   : > { %v1152_v10 = vadd.f32 %v1145_v8, %v1630_v7  ;;  %v1316_v7 = vld [vmem:[%s1760_s9] ss:$0 sm:$0xff] }
 0x56d   : > { %v1147_v11 = vpop.f32.mrf.mxu0 }
 0x56e   : > { %v1153_v12 = vsel %vm494_vm1, %v1152_v10, 0.0 }
 0x56f   : > { %1154 = vadd.xlane.f32.xlu1 %v1153_v12  ;;  %v1419_v13 = vpop.f32.mrf.mxu0 }
 0x5f8   : > { %v1155_v14 = vpop.xlane.xlu1 %1154 }
 0x5f9   : > { %v1157_v15 = vmul.f32 0.03125, %v1155_v14 }
 0x5fb   : > { %v1158_v16 = vsub.f32 %v1152_v10, %v1157_v15 }
 0x5fd   : > { %v1159_v17 = vmul.f32 %v1158_v16, %v1158_v16 }
 0x5ff   : > { %v1160_v18 = vsel %vm494_vm1, %v1159_v17, 0.0 }
 0x600   : > { %1161 = vadd.xlane.f32.xlu0 %v1160_v18 }
 0x689   : > { %v1162_v19 = vpop.xlane.xlu0 %1161 }
 0x68a   : > { %v1163_v20 = vmul.f32 0.03125, %v1162_v19 }
 0x68c   : > { %v1164_v21 = vadd.f32 1e-05, %v1163_v20 }
 0x68e   : > { %1480 = vrsqrt.f32 %v1164_v21 }
 0x69b   : > { %v1481_v22 = vpop.eup %1480 }
 0x69c   : > { %v1166_v23 = vmul.f32 %v1481_v22, %v1158_v16 }
 0x69e   : > { %v1173_v26 = vmul.f32 %v1316_v7, %v1166_v23 }
 0x6a0   : > { %v1180_v27 = vadd.f32 %v1317_v24, %v1173_v26 }
 0x6a2   : > { %1181 = vst.msk [vmem:[%s460_s24] sm:$0xff] %vm494_vm1, %v1180_v27 }
 0x6a3 PF: > { %s21_s19 = sadd.s32 1, %s1504_s19   ;;  %s1765_s17 = smov %s1500_s18 }
 0x6a4   : > { %p18_p5 = scmp.ge.s32.totalorder %s21_s19, 4   ;;  %s1766_s18 = smov %s1768_s20 }
 0x6a6   :  { %20 = sbr.rel (!%p18_p5) target bundleno = 2 (0x2), region = 104 }

</bundles_post_ra>
